<compile_context>
chip_gen: v5e
topology: v5e:2x2
jax: 0.10.0
libtpu: 0.0.40
codegen_flags: <defaults>
</compile_context>

<pallas_src>
import math
import numpy as np
import jax
import jax.numpy as jnp
from jax import lax
from jax.experimental import pallas as pl
from jax.experimental.pallas import tpu as pltpu

# ---- model / problem sizes (consistent with the PyTorch module defaults) ----
B, S, F = 2, 8, 16            # batch, sequence length, input_size
E, H, L, FF = 16, 4, 2, 128   # embed_dim, nhead, num_layers, dim_feedforward
HD = E // H                   # head dim
EPS = 1e-5                    # LayerNorm eps (PyTorch default)
SCALE = 1.0 / math.sqrt(HD)

# ---------------- packed weight slab layout (rows of a (W_ROWS, 128) array) --
LANES = 128
R_WP = 0                      # input_proj.weight^T  : rows [0, F),  cols [0, E)
R_WFC = R_WP + F              # fc.weight^T          : rows [F, F+E), cols [0, 1)
R_LAYER = R_WFC + E           # per-layer blocks start here
O_INW = 0                     # (E, 3E)
O_OUTW = E                    # (E, E)
O_W1 = 2 * E                  # (E, FF)
O_W2 = 3 * E                  # (FF, E)
LAYER_ROWS = 3 * E + FF       # 176
W_ROWS = R_LAYER + L * LAYER_ROWS  # 384

# ---------------- packed vector slab layout (rows of a (V_ROWS, 128) array) --
V_BP = 0                      # input_proj.bias (E)
V_BFC = 1                     # fc.bias (1)
V_LAYER = 2
VI_INB, VI_OUTB, VI_B1, VI_B2, VI_G1, VI_BE1, VI_G2, VI_BE2 = range(8)
V_PER_LAYER = 8
V_ROWS = V_LAYER + L * V_PER_LAYER  # 18


def _ln(x, gamma, beta):
    mu = jnp.mean(x, axis=-1, keepdims=True)
    xc = x - mu
    var = jnp.mean(xc * xc, axis=-1, keepdims=True)
    return xc * lax.rsqrt(var + EPS) * gamma + beta


def _softmax_rows(sc):
    sc = sc - jnp.max(sc, axis=-1, keepdims=True)
    e = jnp.exp(sc)
    inv = pl.reciprocal(jnp.sum(e, axis=-1, keepdims=True), approx=True)  # EUP
    return e * inv


# --------------------------- Pallas kernel ----------------------------------
def transformer_kernel(x_ref, w_ref, v_ref, o_ref):
    # x_ref: (B*S, F)  w_ref: (W_ROWS, 128)  v_ref: (V_ROWS, 128)  o_ref: (B, 1)
    x = x_ref[...]

    wp = w_ref[R_WP:R_WP + F, 0:E]
    bp = v_ref[V_BP:V_BP + 1, 0:E]
    h = jnp.dot(x, wp, preferred_element_type=jnp.float32) + bp      # (B*S, E)

    for l in range(L):  # static unroll over layers
        wb = R_LAYER + l * LAYER_ROWS
        vb = V_LAYER + l * V_PER_LAYER
        inw = w_ref[wb + O_INW: wb + O_INW + E, 0:3 * E]
        w1 = w_ref[wb + O_W1: wb + O_W1 + E, 0:FF]
        w2 = w_ref[wb + O_W2: wb + O_W2 + FF, 0:E]
        outw_r0 = wb + O_OUTW
        inb = v_ref[vb + VI_INB: vb + VI_INB + 1, 0:3 * E]
        outb = v_ref[vb + VI_OUTB: vb + VI_OUTB + 1, 0:E]
        b1 = v_ref[vb + VI_B1: vb + VI_B1 + 1, 0:FF]
        b2 = v_ref[vb + VI_B2: vb + VI_B2 + 1, 0:E]
        g1 = v_ref[vb + VI_G1: vb + VI_G1 + 1, 0:E]
        be1 = v_ref[vb + VI_BE1: vb + VI_BE1 + 1, 0:E]
        g2 = v_ref[vb + VI_G2: vb + VI_G2 + 1, 0:E]
        be2 = v_ref[vb + VI_BE2: vb + VI_BE2 + 1, 0:E]

        qkv = jnp.dot(h, inw, preferred_element_type=jnp.float32) + inb  # (B*S, 3E)
        last_layer = (l == L - 1)

        if not last_layer:
            # -------- full-sequence attention + FF on all B*S rows ----------
            attn_rows = []
            for b in range(B):
                r0 = b * S
                acc = None
                for hh in range(H):
                    c0 = hh * HD
                    q = qkv[r0:r0 + S, c0:c0 + HD]
                    k = qkv[r0:r0 + S, E + c0:E + c0 + HD]
                    v = qkv[r0:r0 + S, 2 * E + c0:2 * E + c0 + HD]
                    sc = lax.dot_general(q, k, (((1,), (1,)), ((), ())),
                                         preferred_element_type=jnp.float32) * SCALE
                    p = _softmax_rows(sc)                                 # (S, S)
                    ctx = jnp.dot(p, v, preferred_element_type=jnp.float32)
                    ow = w_ref[outw_r0 + c0: outw_r0 + c0 + HD, 0:E]
                    term = jnp.dot(ctx, ow, preferred_element_type=jnp.float32)
                    acc = term if acc is None else acc + term
                attn_rows.append(acc)
            attn = jnp.concatenate(attn_rows, axis=0) + outb              # (B*S, E)
            h = _ln(h + attn, g1, be1)
            ff = jnp.dot(h, w1, preferred_element_type=jnp.float32) + b1
            ff = jnp.maximum(ff, 0.0)
            ff = jnp.dot(ff, w2, preferred_element_type=jnp.float32) + b2
            h = _ln(h + ff, g2, be2)
        else:
            # -------- last layer: only the final token of each sequence -----
            # (q from the last row only; K/V from the full sequence; FF/LN on B rows)
            h_last_rows, attn_rows = [], []
            for b in range(B):
                r0 = b * S
                rl = r0 + S - 1
                acc = None
                for hh in range(H):
                    c0 = hh * HD
                    q = qkv[rl:rl + 1, c0:c0 + HD]                        # (1, HD)
                    k = qkv[r0:r0 + S, E + c0:E + c0 + HD]                # (S, HD)
                    v = qkv[r0:r0 + S, 2 * E + c0:2 * E + c0 + HD]        # (S, HD)
                    sc = lax.dot_general(q, k, (((1,), (1,)), ((), ())),
                                         preferred_element_type=jnp.float32) * SCALE
                    p = _softmax_rows(sc)                                 # (1, S)
                    ctx = jnp.dot(p, v, preferred_element_type=jnp.float32)
                    ow = w_ref[outw_r0 + c0: outw_r0 + c0 + HD, 0:E]
                    term = jnp.dot(ctx, ow, preferred_element_type=jnp.float32)
                    acc = term if acc is None else acc + term
                h_last_rows.append(h[rl:rl + 1, :])
                attn_rows.append(acc)
            h_last = jnp.concatenate(h_last_rows, axis=0)                 # (B, E)
            attn = jnp.concatenate(attn_rows, axis=0) + outb              # (B, E)
            z = _ln(h_last + attn, g1, be1)
            ff = jnp.dot(z, w1, preferred_element_type=jnp.float32) + b1
            ff = jnp.maximum(ff, 0.0)
            ff = jnp.dot(ff, w2, preferred_element_type=jnp.float32) + b2
            z = _ln(z + ff, g2, be2)

            wfc = w_ref[R_WFC:R_WFC + E, 0:1]                             # (E, 1)
            bfc = v_ref[V_BFC:V_BFC + 1, 0:1]                             # (1, 1)
            out = jnp.dot(z, wfc, preferred_element_type=jnp.float32) + bfc
            o_ref[...] = out                                              # single store


# --------------------------- host wrapper -----------------------------------
@jax.jit
def transformer_forward(x, w_pack, v_pack):
    x2d = x.reshape(B * S, F)
    return pl.pallas_call(
        transformer_kernel,
        out_shape=jax.ShapeDtypeStruct((B, 1), jnp.float32),
        in_specs=[pl.BlockSpec(memory_space=pltpu.MemorySpace.VMEM)] * 3,
        out_specs=pl.BlockSpec(memory_space=pltpu.MemorySpace.VMEM),
    )(x2d, w_pack, v_pack)


# --------------------------- parameters -------------------------------------
def init_params(key):
    ks = jax.random.split(key, 20)
    it = iter(range(20))

    def nrm(shape, s=0.1):
        return (s * jax.random.normal(ks[next(it)], shape)).astype(jnp.float32)

    p = {}
    p["wp"] = nrm((E, F))            # input_proj.weight (out, in)
    p["bp"] = nrm((E,))
    p["inw"] = nrm((L, 3 * E, E))    # self_attn.in_proj_weight
    p["inb"] = nrm((L, 3 * E))
    p["outw"] = nrm((L, E, E))       # self_attn.out_proj
    p["outb"] = nrm((L, E))
    p["w1"] = nrm((L, FF, E))        # linear1
    p["b1"] = nrm((L, FF))
    p["w2"] = nrm((L, E, FF))        # linear2
    p["b2"] = nrm((L, E))
    p["g1"] = jnp.ones((L, E), jnp.float32) + nrm((L, E), 0.01)   # norm1
    p["be1"] = nrm((L, E), 0.01)
    p["g2"] = jnp.ones((L, E), jnp.float32) + nrm((L, E), 0.01)   # norm2
    p["be2"] = nrm((L, E), 0.01)
    p["wfc"] = nrm((1, E))           # fc.weight
    p["bfc"] = nrm((1,))
    return p


def pack_params(p):
    """Pack all weights into two (rows, 128) f32 slabs; matrices pre-transposed
    so the kernel computes plain `x @ W + b`."""
    W = np.zeros((W_ROWS, LANES), np.float32)
    W[R_WP:R_WP + F, 0:E] = np.asarray(p["wp"]).T
    W[R_WFC:R_WFC + E, 0:1] = np.asarray(p["wfc"]).T
    for l in range(L):
        wb = R_LAYER + l * LAYER_ROWS
        W[wb + O_INW: wb + O_INW + E, 0:3 * E] = np.asarray(p["inw"][l]).T
        W[wb + O_OUTW: wb + O_OUTW + E, 0:E] = np.asarray(p["outw"][l]).T
        W[wb + O_W1: wb + O_W1 + E, 0:FF] = np.asarray(p["w1"][l]).T
        W[wb + O_W2: wb + O_W2 + FF, 0:E] = np.asarray(p["w2"][l]).T

    V = np.zeros((V_ROWS, LANES), np.float32)
    V[V_BP, 0:E] = np.asarray(p["bp"])
    V[V_BFC, 0:1] = np.asarray(p["bfc"])
    for l in range(L):
        vb = V_LAYER + l * V_PER_LAYER
        V[vb + VI_INB, 0:3 * E] = np.asarray(p["inb"][l])
        V[vb + VI_OUTB, 0:E] = np.asarray(p["outb"][l])
        V[vb + VI_B1, 0:FF] = np.asarray(p["b1"][l])
        V[vb + VI_B2, 0:E] = np.asarray(p["b2"][l])
        V[vb + VI_G1, 0:E] = np.asarray(p["g1"][l])
        V[vb + VI_BE1, 0:E] = np.asarray(p["be1"][l])
        V[vb + VI_G2, 0:E] = np.asarray(p["g2"][l])
        V[vb + VI_BE2, 0:E] = np.asarray(p["be2"][l])
    return jnp.asarray(W), jnp.asarray(V)


# --------------------------- pure-JAX reference ------------------------------
def reference_forward(x, p):
    def ln(v, g, b):
        mu = jnp.mean(v, axis=-1, keepdims=True)
        var = jnp.mean((v - mu) ** 2, axis=-1, keepdims=True)
        return (v - mu) * lax.rsqrt(var + EPS) * g + b

    nb = x.shape[0]
    h = x @ p["wp"].T + p["bp"]  # (B, S, E)
    for l in range(L):
        qkv = h @ p["inw"][l].T + p["inb"][l]
        q, k, v = jnp.split(qkv, 3, axis=-1)
        q = q.reshape(nb, S, H, HD).transpose(0, 2, 1, 3)
        k = k.reshape(nb, S, H, HD).transpose(0, 2, 1, 3)
        v = v.reshape(nb, S, H, HD).transpose(0, 2, 1, 3)
        sc = (q @ k.transpose(0, 1, 3, 2)) / math.sqrt(HD)
        attn_p = jax.nn.softmax(sc, axis=-1)
        attn = (attn_p @ v).transpose(0, 2, 1, 3).reshape(nb, S, E)
        attn = attn @ p["outw"][l].T + p["outb"][l]
        h = ln(h + attn, p["g1"][l], p["be1"][l])
        ff = jax.nn.relu(h @ p["w1"][l].T + p["b1"][l])
        ff = ff @ p["w2"][l].T + p["b2"][l]
        h = ln(h + ff, p["g2"][l], p["be2"][l])
    return h[:, -1, :] @ p["wfc"].T + p["bfc"]


# --------------------------- main --------------------------------------------
if __name__ == "__main__":
    key = jax.random.PRNGKey(0)
    kx, kp = jax.random.split(key)
    x = jax.random.normal(kx, (B, S, F), jnp.float32)
    params = init_params(kp)
    w_pack, v_pack = pack_params(params)

    out = transformer_forward(x, w_pack, v_pack)
    out = jax.block_until_ready(out)
    assert out.shape == (B, 1)

    ref = reference_forward(x, params)
    # tolerance accounts for the EUP approximate reciprocal used in softmax
    np.testing.assert_allclose(np.asarray(out), np.asarray(ref), atol=2e-3, rtol=2e-3)
    print("KERNEL_OK")
</pallas_src>

<mosaic_0001>
module attributes {stable_mosaic.version = 11 : i64} {
  func.func @transformer_kernel(%arg0: memref<16x16xf32, #tpu.memory_space<vmem>>, %arg1: memref<384x128xf32, #tpu.memory_space<vmem>>, %arg2: memref<18x128xf32, #tpu.memory_space<vmem>>, %arg3: memref<2x1xf32, #tpu.memory_space<vmem>>) attributes {dimension_semantics = [], scalar_prefetch = 0 : i64, scratch_operands = 0 : i64, tpu.core_type = #tpu.core_type<tc>} {
    %c0 = arith.constant 0 : index
    %c0_0 = arith.constant 0 : index
    %0 = vector.load %arg0[%c0, %c0_0] : memref<16x16xf32, #tpu.memory_space<vmem>>, vector<16x16xf32>
    %c0_1 = arith.constant 0 : index
    %c0_2 = arith.constant 0 : index
    %1 = vector.load %arg1[%c0_1, %c0_2] : memref<384x128xf32, #tpu.memory_space<vmem>>, vector<16x16xf32>
    %c0_3 = arith.constant 0 : index
    %c0_4 = arith.constant 0 : index
    %2 = vector.load %arg2[%c0_3, %c0_4] : memref<18x128xf32, #tpu.memory_space<vmem>>, vector<1x16xf32>
    %cst = arith.constant dense<0.000000e+00> : vector<16x16xf32>
    %3 = tpu.matmul %0, %1, %cst {dimension_numbers = #tpu.dot_dimension_numbers<[1], [0], [0], [1], [0, 0, 1, 1], [], []>} : vector<16x16xf32>, vector<16x16xf32>, vector<16x16xf32> -> vector<16x16xf32>
    %4 = vector.broadcast %2 : vector<1x16xf32> to vector<16x16xf32>
    %5 = arith.addf %3, %4 : vector<16x16xf32>
    %c32 = arith.constant 32 : index
    %c0_5 = arith.constant 0 : index
    %6 = vector.load %arg1[%c32, %c0_5] : memref<384x128xf32, #tpu.memory_space<vmem>>, vector<16x48xf32>
    %c64 = arith.constant 64 : index
    %c0_6 = arith.constant 0 : index
    %7 = vector.load %arg1[%c64, %c0_6] : memref<384x128xf32, #tpu.memory_space<vmem>>, vector<16x128xf32>
    %c80 = arith.constant 80 : index
    %c0_7 = arith.constant 0 : index
    %8 = vector.load %arg1[%c80, %c0_7] : memref<384x128xf32, #tpu.memory_space<vmem>>, vector<128x16xf32>
    %c2 = arith.constant 2 : index
    %c0_8 = arith.constant 0 : index
    %9 = vector.load %arg2[%c2, %c0_8] : memref<18x128xf32, #tpu.memory_space<vmem>>, vector<1x48xf32>
    %c3 = arith.constant 3 : index
    %c0_9 = arith.constant 0 : index
    %10 = vector.load %arg2[%c3, %c0_9] : memref<18x128xf32, #tpu.memory_space<vmem>>, vector<1x16xf32>
    %c4 = arith.constant 4 : index
    %c0_10 = arith.constant 0 : index
    %11 = vector.load %arg2[%c4, %c0_10] : memref<18x128xf32, #tpu.memory_space<vmem>>, vector<1x128xf32>
    %c5 = arith.constant 5 : index
    %c0_11 = arith.constant 0 : index
    %12 = vector.load %arg2[%c5, %c0_11] : memref<18x128xf32, #tpu.memory_space<vmem>>, vector<1x16xf32>
    %c6 = arith.constant 6 : index
    %c0_12 = arith.constant 0 : index
    %13 = vector.load %arg2[%c6, %c0_12] : memref<18x128xf32, #tpu.memory_space<vmem>>, vector<1x16xf32>
    %c7 = arith.constant 7 : index
    %c0_13 = arith.constant 0 : index
    %14 = vector.load %arg2[%c7, %c0_13] : memref<18x128xf32, #tpu.memory_space<vmem>>, vector<1x16xf32>
    %c8 = arith.constant 8 : index
    %c0_14 = arith.constant 0 : index
    %15 = vector.load %arg2[%c8, %c0_14] : memref<18x128xf32, #tpu.memory_space<vmem>>, vector<1x16xf32>
    %c9 = arith.constant 9 : index
    %c0_15 = arith.constant 0 : index
    %16 = vector.load %arg2[%c9, %c0_15] : memref<18x128xf32, #tpu.memory_space<vmem>>, vector<1x16xf32>
    %cst_16 = arith.constant dense<0.000000e+00> : vector<16x48xf32>
    %17 = tpu.matmul %5, %6, %cst_16 {dimension_numbers = #tpu.dot_dimension_numbers<[1], [0], [0], [1], [0, 0, 1, 1], [], []>} : vector<16x16xf32>, vector<16x48xf32>, vector<16x48xf32> -> vector<16x48xf32>
    %18 = vector.broadcast %9 : vector<1x48xf32> to vector<16x48xf32>
    %19 = arith.addf %17, %18 : vector<16x48xf32>
    %20 = vector.extract_strided_slice %19 {offsets = [0, 0], sizes = [8, 4], strides = [1, 1]} : vector<16x48xf32> to vector<8x4xf32>
    %21 = vector.extract_strided_slice %19 {offsets = [0, 16], sizes = [8, 4], strides = [1, 1]} : vector<16x48xf32> to vector<8x4xf32>
    %22 = vector.extract_strided_slice %19 {offsets = [0, 32], sizes = [8, 4], strides = [1, 1]} : vector<16x48xf32> to vector<8x4xf32>
    %cst_17 = arith.constant dense<0.000000e+00> : vector<8x8xf32>
    %23 = tpu.matmul %20, %21, %cst_17 {dimension_numbers = #tpu.dot_dimension_numbers<[1], [1], [0], [0], [0, 0, 1, 0], [], []>} : vector<8x4xf32>, vector<8x4xf32>, vector<8x8xf32> -> vector<8x8xf32>
    %cst_18 = arith.constant 5.000000e-01 : f32
    %24 = vector.broadcast %cst_18 : f32 to vector<8x8xf32>
    %25 = arith.mulf %23, %24 : vector<8x8xf32>
    %cst_19 = arith.constant dense<0xFF800000> : vector<8xf32>
    %26 = vector.multi_reduction <maximumf>, %25, %cst_19 [1] : vector<8x8xf32> to vector<8xf32>
    %27 = vector.shape_cast %26 : vector<8xf32> to vector<8x1xf32>
    %28 = vector.broadcast %27 : vector<8x1xf32> to vector<8x8xf32>
    %29 = arith.subf %25, %28 : vector<8x8xf32>
    %30 = math.exp %29 : vector<8x8xf32>
    %cst_20 = arith.constant dense<0.000000e+00> : vector<8xf32>
    %31 = vector.multi_reduction <add>, %30, %cst_20 [1] : vector<8x8xf32> to vector<8xf32>
    %32 = vector.shape_cast %31 : vector<8xf32> to vector<8x1xf32>
    %33 = tpu.reciprocal %32 {approx = true} : vector<8x1xf32> -> vector<8x1xf32>
    %34 = vector.broadcast %33 : vector<8x1xf32> to vector<8x8xf32>
    %35 = arith.mulf %30, %34 : vector<8x8xf32>
    %cst_21 = arith.constant dense<0.000000e+00> : vector<8x4xf32>
    %36 = tpu.matmul %35, %22, %cst_21 {dimension_numbers = #tpu.dot_dimension_numbers<[1], [0], [0], [1], [0, 0, 1, 1], [], []>} : vector<8x8xf32>, vector<8x4xf32>, vector<8x4xf32> -> vector<8x4xf32>
    %c48 = arith.constant 48 : index
    %c0_22 = arith.constant 0 : index
    %37 = vector.load %arg1[%c48, %c0_22] : memref<384x128xf32, #tpu.memory_space<vmem>>, vector<4x16xf32>
    %cst_23 = arith.constant dense<0.000000e+00> : vector<8x16xf32>
    %38 = tpu.matmul %36, %37, %cst_23 {dimension_numbers = #tpu.dot_dimension_numbers<[1], [0], [0], [1], [0, 0, 1, 1], [], []>} : vector<8x4xf32>, vector<4x16xf32>, vector<8x16xf32> -> vector<8x16xf32>
    %39 = vector.extract_strided_slice %19 {offsets = [0, 4], sizes = [8, 4], strides = [1, 1]} : vector<16x48xf32> to vector<8x4xf32>
    %40 = vector.extract_strided_slice %19 {offsets = [0, 20], sizes = [8, 4], strides = [1, 1]} : vector<16x48xf32> to vector<8x4xf32>
    %41 = vector.extract_strided_slice %19 {offsets = [0, 36], sizes = [8, 4], strides = [1, 1]} : vector<16x48xf32> to vector<8x4xf32>
    %cst_24 = arith.constant dense<0.000000e+00> : vector<8x8xf32>
    %42 = tpu.matmul %39, %40, %cst_24 {dimension_numbers = #tpu.dot_dimension_numbers<[1], [1], [0], [0], [0, 0, 1, 0], [], []>} : vector<8x4xf32>, vector<8x4xf32>, vector<8x8xf32> -> vector<8x8xf32>
    %cst_25 = arith.constant 5.000000e-01 : f32
    %43 = vector.broadcast %cst_25 : f32 to vector<8x8xf32>
    %44 = arith.mulf %42, %43 : vector<8x8xf32>
    %cst_26 = arith.constant dense<0xFF800000> : vector<8xf32>
    %45 = vector.multi_reduction <maximumf>, %44, %cst_26 [1] : vector<8x8xf32> to vector<8xf32>
    %46 = vector.shape_cast %45 : vector<8xf32> to vector<8x1xf32>
    %47 = vector.broadcast %46 : vector<8x1xf32> to vector<8x8xf32>
    %48 = arith.subf %44, %47 : vector<8x8xf32>
    %49 = math.exp %48 : vector<8x8xf32>
    %cst_27 = arith.constant dense<0.000000e+00> : vector<8xf32>
    %50 = vector.multi_reduction <add>, %49, %cst_27 [1] : vector<8x8xf32> to vector<8xf32>
    %51 = vector.shape_cast %50 : vector<8xf32> to vector<8x1xf32>
    %52 = tpu.reciprocal %51 {approx = true} : vector<8x1xf32> -> vector<8x1xf32>
    %53 = vector.broadcast %52 : vector<8x1xf32> to vector<8x8xf32>
    %54 = arith.mulf %49, %53 : vector<8x8xf32>
    %cst_28 = arith.constant dense<0.000000e+00> : vector<8x4xf32>
    %55 = tpu.matmul %54, %41, %cst_28 {dimension_numbers = #tpu.dot_dimension_numbers<[1], [0], [0], [1], [0, 0, 1, 1], [], []>} : vector<8x8xf32>, vector<8x4xf32>, vector<8x4xf32> -> vector<8x4xf32>
    %c52 = arith.constant 52 : index
    %c0_29 = arith.constant 0 : index
    %56 = vector.load %arg1[%c52, %c0_29] : memref<384x128xf32, #tpu.memory_space<vmem>>, vector<4x16xf32>
    %cst_30 = arith.constant dense<0.000000e+00> : vector<8x16xf32>
    %57 = tpu.matmul %55, %56, %cst_30 {dimension_numbers = #tpu.dot_dimension_numbers<[1], [0], [0], [1], [0, 0, 1, 1], [], []>} : vector<8x4xf32>, vector<4x16xf32>, vector<8x16xf32> -> vector<8x16xf32>
    %58 = arith.addf %38, %57 : vector<8x16xf32>
    %59 = vector.extract_strided_slice %19 {offsets = [0, 8], sizes = [8, 4], strides = [1, 1]} : vector<16x48xf32> to vector<8x4xf32>
    %60 = vector.extract_strided_slice %19 {offsets = [0, 24], sizes = [8, 4], strides = [1, 1]} : vector<16x48xf32> to vector<8x4xf32>
    %61 = vector.extract_strided_slice %19 {offsets = [0, 40], sizes = [8, 4], strides = [1, 1]} : vector<16x48xf32> to vector<8x4xf32>
    %cst_31 = arith.constant dense<0.000000e+00> : vector<8x8xf32>
    %62 = tpu.matmul %59, %60, %cst_31 {dimension_numbers = #tpu.dot_dimension_numbers<[1], [1], [0], [0], [0, 0, 1, 0], [], []>} : vector<8x4xf32>, vector<8x4xf32>, vector<8x8xf32> -> vector<8x8xf32>
    %cst_32 = arith.constant 5.000000e-01 : f32
    %63 = vector.broadcast %cst_32 : f32 to vector<8x8xf32>
    %64 = arith.mulf %62, %63 : vector<8x8xf32>
    %cst_33 = arith.constant dense<0xFF800000> : vector<8xf32>
    %65 = vector.multi_reduction <maximumf>, %64, %cst_33 [1] : vector<8x8xf32> to vector<8xf32>
    %66 = vector.shape_cast %65 : vector<8xf32> to vector<8x1xf32>
    %67 = vector.broadcast %66 : vector<8x1xf32> to vector<8x8xf32>
    %68 = arith.subf %64, %67 : vector<8x8xf32>
    %69 = math.exp %68 : vector<8x8xf32>
    %cst_34 = arith.constant dense<0.000000e+00> : vector<8xf32>
    %70 = vector.multi_reduction <add>, %69, %cst_34 [1] : vector<8x8xf32> to vector<8xf32>
    %71 = vector.shape_cast %70 : vector<8xf32> to vector<8x1xf32>
    %72 = tpu.reciprocal %71 {approx = true} : vector<8x1xf32> -> vector<8x1xf32>
    %73 = vector.broadcast %72 : vector<8x1xf32> to vector<8x8xf32>
    %74 = arith.mulf %69, %73 : vector<8x8xf32>
    %cst_35 = arith.constant dense<0.000000e+00> : vector<8x4xf32>
    %75 = tpu.matmul %74, %61, %cst_35 {dimension_numbers = #tpu.dot_dimension_numbers<[1], [0], [0], [1], [0, 0, 1, 1], [], []>} : vector<8x8xf32>, vector<8x4xf32>, vector<8x4xf32> -> vector<8x4xf32>
    %c56 = arith.constant 56 : index
    %c0_36 = arith.constant 0 : index
    %76 = vector.load %arg1[%c56, %c0_36] : memref<384x128xf32, #tpu.memory_space<vmem>>, vector<4x16xf32>
    %cst_37 = arith.constant dense<0.000000e+00> : vector<8x16xf32>
    %77 = tpu.matmul %75, %76, %cst_37 {dimension_numbers = #tpu.dot_dimension_numbers<[1], [0], [0], [1], [0, 0, 1, 1], [], []>} : vector<8x4xf32>, vector<4x16xf32>, vector<8x16xf32> -> vector<8x16xf32>
    %78 = arith.addf %58, %77 : vector<8x16xf32>
    %79 = vector.extract_strided_slice %19 {offsets = [0, 12], sizes = [8, 4], strides = [1, 1]} : vector<16x48xf32> to vector<8x4xf32>
    %80 = vector.extract_strided_slice %19 {offsets = [0, 28], sizes = [8, 4], strides = [1, 1]} : vector<16x48xf32> to vector<8x4xf32>
    %81 = vector.extract_strided_slice %19 {offsets = [0, 44], sizes = [8, 4], strides = [1, 1]} : vector<16x48xf32> to vector<8x4xf32>
    %cst_38 = arith.constant dense<0.000000e+00> : vector<8x8xf32>
    %82 = tpu.matmul %79, %80, %cst_38 {dimension_numbers = #tpu.dot_dimension_numbers<[1], [1], [0], [0], [0, 0, 1, 0], [], []>} : vector<8x4xf32>, vector<8x4xf32>, vector<8x8xf32> -> vector<8x8xf32>
    %cst_39 = arith.constant 5.000000e-01 : f32
    %83 = vector.broadcast %cst_39 : f32 to vector<8x8xf32>
    %84 = arith.mulf %82, %83 : vector<8x8xf32>
    %cst_40 = arith.constant dense<0xFF800000> : vector<8xf32>
    %85 = vector.multi_reduction <maximumf>, %84, %cst_40 [1] : vector<8x8xf32> to vector<8xf32>
    %86 = vector.shape_cast %85 : vector<8xf32> to vector<8x1xf32>
    %87 = vector.broadcast %86 : vector<8x1xf32> to vector<8x8xf32>
    %88 = arith.subf %84, %87 : vector<8x8xf32>
    %89 = math.exp %88 : vector<8x8xf32>
    %cst_41 = arith.constant dense<0.000000e+00> : vector<8xf32>
    %90 = vector.multi_reduction <add>, %89, %cst_41 [1] : vector<8x8xf32> to vector<8xf32>
    %91 = vector.shape_cast %90 : vector<8xf32> to vector<8x1xf32>
    %92 = tpu.reciprocal %91 {approx = true} : vector<8x1xf32> -> vector<8x1xf32>
    %93 = vector.broadcast %92 : vector<8x1xf32> to vector<8x8xf32>
    %94 = arith.mulf %89, %93 : vector<8x8xf32>
    %cst_42 = arith.constant dense<0.000000e+00> : vector<8x4xf32>
    %95 = tpu.matmul %94, %81, %cst_42 {dimension_numbers = #tpu.dot_dimension_numbers<[1], [0], [0], [1], [0, 0, 1, 1], [], []>} : vector<8x8xf32>, vector<8x4xf32>, vector<8x4xf32> -> vector<8x4xf32>
    %c60 = arith.constant 60 : index
    %c0_43 = arith.constant 0 : index
    %96 = vector.load %arg1[%c60, %c0_43] : memref<384x128xf32, #tpu.memory_space<vmem>>, vector<4x16xf32>
    %cst_44 = arith.constant dense<0.000000e+00> : vector<8x16xf32>
    %97 = tpu.matmul %95, %96, %cst_44 {dimension_numbers = #tpu.dot_dimension_numbers<[1], [0], [0], [1], [0, 0, 1, 1], [], []>} : vector<8x4xf32>, vector<4x16xf32>, vector<8x16xf32> -> vector<8x16xf32>
    %98 = arith.addf %78, %97 : vector<8x16xf32>
    %99 = vector.extract_strided_slice %19 {offsets = [8, 0], sizes = [8, 4], strides = [1, 1]} : vector<16x48xf32> to vector<8x4xf32>
    %100 = vector.extract_strided_slice %19 {offsets = [8, 16], sizes = [8, 4], strides = [1, 1]} : vector<16x48xf32> to vector<8x4xf32>
    %101 = vector.extract_strided_slice %19 {offsets = [8, 32], sizes = [8, 4], strides = [1, 1]} : vector<16x48xf32> to vector<8x4xf32>
    %cst_45 = arith.constant dense<0.000000e+00> : vector<8x8xf32>
    %102 = tpu.matmul %99, %100, %cst_45 {dimension_numbers = #tpu.dot_dimension_numbers<[1], [1], [0], [0], [0, 0, 1, 0], [], []>} : vector<8x4xf32>, vector<8x4xf32>, vector<8x8xf32> -> vector<8x8xf32>
    %cst_46 = arith.constant 5.000000e-01 : f32
    %103 = vector.broadcast %cst_46 : f32 to vector<8x8xf32>
    %104 = arith.mulf %102, %103 : vector<8x8xf32>
    %cst_47 = arith.constant dense<0xFF800000> : vector<8xf32>
    %105 = vector.multi_reduction <maximumf>, %104, %cst_47 [1] : vector<8x8xf32> to vector<8xf32>
    %106 = vector.shape_cast %105 : vector<8xf32> to vector<8x1xf32>
    %107 = vector.broadcast %106 : vector<8x1xf32> to vector<8x8xf32>
    %108 = arith.subf %104, %107 : vector<8x8xf32>
    %109 = math.exp %108 : vector<8x8xf32>
    %cst_48 = arith.constant dense<0.000000e+00> : vector<8xf32>
    %110 = vector.multi_reduction <add>, %109, %cst_48 [1] : vector<8x8xf32> to vector<8xf32>
    %111 = vector.shape_cast %110 : vector<8xf32> to vector<8x1xf32>
    %112 = tpu.reciprocal %111 {approx = true} : vector<8x1xf32> -> vector<8x1xf32>
    %113 = vector.broadcast %112 : vector<8x1xf32> to vector<8x8xf32>
    %114 = arith.mulf %109, %113 : vector<8x8xf32>
    %cst_49 = arith.constant dense<0.000000e+00> : vector<8x4xf32>
    %115 = tpu.matmul %114, %101, %cst_49 {dimension_numbers = #tpu.dot_dimension_numbers<[1], [0], [0], [1], [0, 0, 1, 1], [], []>} : vector<8x8xf32>, vector<8x4xf32>, vector<8x4xf32> -> vector<8x4xf32>
    %c48_50 = arith.constant 48 : index
    %c0_51 = arith.constant 0 : index
    %116 = vector.load %arg1[%c48_50, %c0_51] : memref<384x128xf32, #tpu.memory_space<vmem>>, vector<4x16xf32>
    %cst_52 = arith.constant dense<0.000000e+00> : vector<8x16xf32>
    %117 = tpu.matmul %115, %116, %cst_52 {dimension_numbers = #tpu.dot_dimension_numbers<[1], [0], [0], [1], [0, 0, 1, 1], [], []>} : vector<8x4xf32>, vector<4x16xf32>, vector<8x16xf32> -> vector<8x16xf32>
    %118 = vector.extract_strided_slice %19 {offsets = [8, 4], sizes = [8, 4], strides = [1, 1]} : vector<16x48xf32> to vector<8x4xf32>
    %119 = vector.extract_strided_slice %19 {offsets = [8, 20], sizes = [8, 4], strides = [1, 1]} : vector<16x48xf32> to vector<8x4xf32>
    %120 = vector.extract_strided_slice %19 {offsets = [8, 36], sizes = [8, 4], strides = [1, 1]} : vector<16x48xf32> to vector<8x4xf32>
    %cst_53 = arith.constant dense<0.000000e+00> : vector<8x8xf32>
    %121 = tpu.matmul %118, %119, %cst_53 {dimension_numbers = #tpu.dot_dimension_numbers<[1], [1], [0], [0], [0, 0, 1, 0], [], []>} : vector<8x4xf32>, vector<8x4xf32>, vector<8x8xf32> -> vector<8x8xf32>
    %cst_54 = arith.constant 5.000000e-01 : f32
    %122 = vector.broadcast %cst_54 : f32 to vector<8x8xf32>
    %123 = arith.mulf %121, %122 : vector<8x8xf32>
    %cst_55 = arith.constant dense<0xFF800000> : vector<8xf32>
    %124 = vector.multi_reduction <maximumf>, %123, %cst_55 [1] : vector<8x8xf32> to vector<8xf32>
    %125 = vector.shape_cast %124 : vector<8xf32> to vector<8x1xf32>
    %126 = vector.broadcast %125 : vector<8x1xf32> to vector<8x8xf32>
    %127 = arith.subf %123, %126 : vector<8x8xf32>
    %128 = math.exp %127 : vector<8x8xf32>
    %cst_56 = arith.constant dense<0.000000e+00> : vector<8xf32>
    %129 = vector.multi_reduction <add>, %128, %cst_56 [1] : vector<8x8xf32> to vector<8xf32>
    %130 = vector.shape_cast %129 : vector<8xf32> to vector<8x1xf32>
    %131 = tpu.reciprocal %130 {approx = true} : vector<8x1xf32> -> vector<8x1xf32>
    %132 = vector.broadcast %131 : vector<8x1xf32> to vector<8x8xf32>
    %133 = arith.mulf %128, %132 : vector<8x8xf32>
    %cst_57 = arith.constant dense<0.000000e+00> : vector<8x4xf32>
    %134 = tpu.matmul %133, %120, %cst_57 {dimension_numbers = #tpu.dot_dimension_numbers<[1], [0], [0], [1], [0, 0, 1, 1], [], []>} : vector<8x8xf32>, vector<8x4xf32>, vector<8x4xf32> -> vector<8x4xf32>
    %c52_58 = arith.constant 52 : index
    %c0_59 = arith.constant 0 : index
    %135 = vector.load %arg1[%c52_58, %c0_59] : memref<384x128xf32, #tpu.memory_space<vmem>>, vector<4x16xf32>
    %cst_60 = arith.constant dense<0.000000e+00> : vector<8x16xf32>
    %136 = tpu.matmul %134, %135, %cst_60 {dimension_numbers = #tpu.dot_dimension_numbers<[1], [0], [0], [1], [0, 0, 1, 1], [], []>} : vector<8x4xf32>, vector<4x16xf32>, vector<8x16xf32> -> vector<8x16xf32>
    %137 = arith.addf %117, %136 : vector<8x16xf32>
    %138 = vector.extract_strided_slice %19 {offsets = [8, 8], sizes = [8, 4], strides = [1, 1]} : vector<16x48xf32> to vector<8x4xf32>
    %139 = vector.extract_strided_slice %19 {offsets = [8, 24], sizes = [8, 4], strides = [1, 1]} : vector<16x48xf32> to vector<8x4xf32>
    %140 = vector.extract_strided_slice %19 {offsets = [8, 40], sizes = [8, 4], strides = [1, 1]} : vector<16x48xf32> to vector<8x4xf32>
    %cst_61 = arith.constant dense<0.000000e+00> : vector<8x8xf32>
    %141 = tpu.matmul %138, %139, %cst_61 {dimension_numbers = #tpu.dot_dimension_numbers<[1], [1], [0], [0], [0, 0, 1, 0], [], []>} : vector<8x4xf32>, vector<8x4xf32>, vector<8x8xf32> -> vector<8x8xf32>
    %cst_62 = arith.constant 5.000000e-01 : f32
    %142 = vector.broadcast %cst_62 : f32 to vector<8x8xf32>
    %143 = arith.mulf %141, %142 : vector<8x8xf32>
    %cst_63 = arith.constant dense<0xFF800000> : vector<8xf32>
    %144 = vector.multi_reduction <maximumf>, %143, %cst_63 [1] : vector<8x8xf32> to vector<8xf32>
    %145 = vector.shape_cast %144 : vector<8xf32> to vector<8x1xf32>
    %146 = vector.broadcast %145 : vector<8x1xf32> to vector<8x8xf32>
    %147 = arith.subf %143, %146 : vector<8x8xf32>
    %148 = math.exp %147 : vector<8x8xf32>
    %cst_64 = arith.constant dense<0.000000e+00> : vector<8xf32>
    %149 = vector.multi_reduction <add>, %148, %cst_64 [1] : vector<8x8xf32> to vector<8xf32>
    %150 = vector.shape_cast %149 : vector<8xf32> to vector<8x1xf32>
    %151 = tpu.reciprocal %150 {approx = true} : vector<8x1xf32> -> vector<8x1xf32>
    %152 = vector.broadcast %151 : vector<8x1xf32> to vector<8x8xf32>
    %153 = arith.mulf %148, %152 : vector<8x8xf32>
    %cst_65 = arith.constant dense<0.000000e+00> : vector<8x4xf32>
    %154 = tpu.matmul %153, %140, %cst_65 {dimension_numbers = #tpu.dot_dimension_numbers<[1], [0], [0], [1], [0, 0, 1, 1], [], []>} : vector<8x8xf32>, vector<8x4xf32>, vector<8x4xf32> -> vector<8x4xf32>
    %c56_66 = arith.constant 56 : index
    %c0_67 = arith.constant 0 : index
    %155 = vector.load %arg1[%c56_66, %c0_67] : memref<384x128xf32, #tpu.memory_space<vmem>>, vector<4x16xf32>
    %cst_68 = arith.constant dense<0.000000e+00> : vector<8x16xf32>
    %156 = tpu.matmul %154, %155, %cst_68 {dimension_numbers = #tpu.dot_dimension_numbers<[1], [0], [0], [1], [0, 0, 1, 1], [], []>} : vector<8x4xf32>, vector<4x16xf32>, vector<8x16xf32> -> vector<8x16xf32>
    %157 = arith.addf %137, %156 : vector<8x16xf32>
    %158 = vector.extract_strided_slice %19 {offsets = [8, 12], sizes = [8, 4], strides = [1, 1]} : vector<16x48xf32> to vector<8x4xf32>
    %159 = vector.extract_strided_slice %19 {offsets = [8, 28], sizes = [8, 4], strides = [1, 1]} : vector<16x48xf32> to vector<8x4xf32>
    %160 = vector.extract_strided_slice %19 {offsets = [8, 44], sizes = [8, 4], strides = [1, 1]} : vector<16x48xf32> to vector<8x4xf32>
    %cst_69 = arith.constant dense<0.000000e+00> : vector<8x8xf32>
    %161 = tpu.matmul %158, %159, %cst_69 {dimension_numbers = #tpu.dot_dimension_numbers<[1], [1], [0], [0], [0, 0, 1, 0], [], []>} : vector<8x4xf32>, vector<8x4xf32>, vector<8x8xf32> -> vector<8x8xf32>
    %cst_70 = arith.constant 5.000000e-01 : f32
    %162 = vector.broadcast %cst_70 : f32 to vector<8x8xf32>
    %163 = arith.mulf %161, %162 : vector<8x8xf32>
    %cst_71 = arith.constant dense<0xFF800000> : vector<8xf32>
    %164 = vector.multi_reduction <maximumf>, %163, %cst_71 [1] : vector<8x8xf32> to vector<8xf32>
    %165 = vector.shape_cast %164 : vector<8xf32> to vector<8x1xf32>
    %166 = vector.broadcast %165 : vector<8x1xf32> to vector<8x8xf32>
    %167 = arith.subf %163, %166 : vector<8x8xf32>
    %168 = math.exp %167 : vector<8x8xf32>
    %cst_72 = arith.constant dense<0.000000e+00> : vector<8xf32>
    %169 = vector.multi_reduction <add>, %168, %cst_72 [1] : vector<8x8xf32> to vector<8xf32>
    %170 = vector.shape_cast %169 : vector<8xf32> to vector<8x1xf32>
    %171 = tpu.reciprocal %170 {approx = true} : vector<8x1xf32> -> vector<8x1xf32>
    %172 = vector.broadcast %171 : vector<8x1xf32> to vector<8x8xf32>
    %173 = arith.mulf %168, %172 : vector<8x8xf32>
    %cst_73 = arith.constant dense<0.000000e+00> : vector<8x4xf32>
    %174 = tpu.matmul %173, %160, %cst_73 {dimension_numbers = #tpu.dot_dimension_numbers<[1], [0], [0], [1], [0, 0, 1, 1], [], []>} : vector<8x8xf32>, vector<8x4xf32>, vector<8x4xf32> -> vector<8x4xf32>
    %c60_74 = arith.constant 60 : index
    %c0_75 = arith.constant 0 : index
    %175 = vector.load %arg1[%c60_74, %c0_75] : memref<384x128xf32, #tpu.memory_space<vmem>>, vector<4x16xf32>
    %cst_76 = arith.constant dense<0.000000e+00> : vector<8x16xf32>
    %176 = tpu.matmul %174, %175, %cst_76 {dimension_numbers = #tpu.dot_dimension_numbers<[1], [0], [0], [1], [0, 0, 1, 1], [], []>} : vector<8x4xf32>, vector<4x16xf32>, vector<8x16xf32> -> vector<8x16xf32>
    %177 = arith.addf %157, %176 : vector<8x16xf32>
    %178 = tpu.concatenate %98, %177 in 0 : vector<8x16xf32>, vector<8x16xf32> -> vector<16x16xf32>
    %179 = vector.broadcast %10 : vector<1x16xf32> to vector<16x16xf32>
    %180 = arith.addf %178, %179 : vector<16x16xf32>
    %181 = arith.addf %5, %180 : vector<16x16xf32>
    %cst_77 = arith.constant dense<0.000000e+00> : vector<16xf32>
    %182 = vector.multi_reduction <add>, %181, %cst_77 [1] : vector<16x16xf32> to vector<16xf32>
    %183 = vector.shape_cast %182 : vector<16xf32> to vector<16x1xf32>
    %cst_78 = arith.constant 1.600000e+01 : f32
    %184 = vector.broadcast %cst_78 : f32 to vector<16x1xf32>
    %185 = arith.divf %183, %184 : vector<16x1xf32>
    %186 = vector.broadcast %185 : vector<16x1xf32> to vector<16x16xf32>
    %187 = arith.subf %181, %186 : vector<16x16xf32>
    %188 = arith.mulf %187, %187 : vector<16x16xf32>
    %cst_79 = arith.constant dense<0.000000e+00> : vector<16xf32>
    %189 = vector.multi_reduction <add>, %188, %cst_79 [1] : vector<16x16xf32> to vector<16xf32>
    %190 = vector.shape_cast %189 : vector<16xf32> to vector<16x1xf32>
    %cst_80 = arith.constant 1.600000e+01 : f32
    %191 = vector.broadcast %cst_80 : f32 to vector<16x1xf32>
    %192 = arith.divf %190, %191 : vector<16x1xf32>
    %cst_81 = arith.constant 9.99999974E-6 : f32
    %193 = vector.broadcast %cst_81 : f32 to vector<16x1xf32>
    %194 = arith.addf %192, %193 : vector<16x1xf32>
    %195 = math.rsqrt %194 : vector<16x1xf32>
    %196 = vector.broadcast %195 : vector<16x1xf32> to vector<16x16xf32>
    %197 = arith.mulf %187, %196 : vector<16x16xf32>
    %198 = vector.broadcast %13 : vector<1x16xf32> to vector<16x16xf32>
    %199 = arith.mulf %197, %198 : vector<16x16xf32>
    %200 = vector.broadcast %14 : vector<1x16xf32> to vector<16x16xf32>
    %201 = arith.addf %199, %200 : vector<16x16xf32>
    %cst_82 = arith.constant dense<0.000000e+00> : vector<16x128xf32>
    %202 = tpu.matmul %201, %7, %cst_82 {dimension_numbers = #tpu.dot_dimension_numbers<[1], [0], [0], [1], [0, 0, 1, 1], [], []>} : vector<16x16xf32>, vector<16x128xf32>, vector<16x128xf32> -> vector<16x128xf32>
    %203 = vector.broadcast %11 : vector<1x128xf32> to vector<16x128xf32>
    %204 = arith.addf %202, %203 : vector<16x128xf32>
    %cst_83 = arith.constant 0.000000e+00 : f32
    %205 = vector.broadcast %cst_83 : f32 to vector<16x128xf32>
    %206 = arith.maximumf %204, %205 : vector<16x128xf32>
    %cst_84 = arith.constant dense<0.000000e+00> : vector<16x16xf32>
    %207 = tpu.matmul %206, %8, %cst_84 {dimension_numbers = #tpu.dot_dimension_numbers<[1], [0], [0], [1], [0, 0, 1, 1], [], []>} : vector<16x128xf32>, vector<128x16xf32>, vector<16x16xf32> -> vector<16x16xf32>
    %208 = vector.broadcast %12 : vector<1x16xf32> to vector<16x16xf32>
    %209 = arith.addf %207, %208 : vector<16x16xf32>
    %210 = arith.addf %201, %209 : vector<16x16xf32>
    %cst_85 = arith.constant dense<0.000000e+00> : vector<16xf32>
    %211 = vector.multi_reduction <add>, %210, %cst_85 [1] : vector<16x16xf32> to vector<16xf32>
    %212 = vector.shape_cast %211 : vector<16xf32> to vector<16x1xf32>
    %cst_86 = arith.constant 1.600000e+01 : f32
    %213 = vector.broadcast %cst_86 : f32 to vector<16x1xf32>
    %214 = arith.divf %212, %213 : vector<16x1xf32>
    %215 = vector.broadcast %214 : vector<16x1xf32> to vector<16x16xf32>
    %216 = arith.subf %210, %215 : vector<16x16xf32>
    %217 = arith.mulf %216, %216 : vector<16x16xf32>
    %cst_87 = arith.constant dense<0.000000e+00> : vector<16xf32>
    %218 = vector.multi_reduction <add>, %217, %cst_87 [1] : vector<16x16xf32> to vector<16xf32>
    %219 = vector.shape_cast %218 : vector<16xf32> to vector<16x1xf32>
    %cst_88 = arith.constant 1.600000e+01 : f32
    %220 = vector.broadcast %cst_88 : f32 to vector<16x1xf32>
    %221 = arith.divf %219, %220 : vector<16x1xf32>
    %cst_89 = arith.constant 9.99999974E-6 : f32
    %222 = vector.broadcast %cst_89 : f32 to vector<16x1xf32>
    %223 = arith.addf %221, %222 : vector<16x1xf32>
    %224 = math.rsqrt %223 : vector<16x1xf32>
    %225 = vector.broadcast %224 : vector<16x1xf32> to vector<16x16xf32>
    %226 = arith.mulf %216, %225 : vector<16x16xf32>
    %227 = vector.broadcast %15 : vector<1x16xf32> to vector<16x16xf32>
    %228 = arith.mulf %226, %227 : vector<16x16xf32>
    %229 = vector.broadcast %16 : vector<1x16xf32> to vector<16x16xf32>
    %230 = arith.addf %228, %229 : vector<16x16xf32>
    %c208 = arith.constant 208 : index
    %c0_90 = arith.constant 0 : index
    %231 = vector.load %arg1[%c208, %c0_90] : memref<384x128xf32, #tpu.memory_space<vmem>>, vector<16x48xf32>
    %c240 = arith.constant 240 : index
    %c0_91 = arith.constant 0 : index
    %232 = vector.load %arg1[%c240, %c0_91] : memref<384x128xf32, #tpu.memory_space<vmem>>, vector<16x128xf32>
    %c256 = arith.constant 256 : index
    %c0_92 = arith.constant 0 : index
    %233 = vector.load %arg1[%c256, %c0_92] : memref<384x128xf32, #tpu.memory_space<vmem>>, vector<128x16xf32>
    %c10 = arith.constant 10 : index
    %c0_93 = arith.constant 0 : index
    %234 = vector.load %arg2[%c10, %c0_93] : memref<18x128xf32, #tpu.memory_space<vmem>>, vector<1x48xf32>
    %c11 = arith.constant 11 : index
    %c0_94 = arith.constant 0 : index
    %235 = vector.load %arg2[%c11, %c0_94] : memref<18x128xf32, #tpu.memory_space<vmem>>, vector<1x16xf32>
    %c12 = arith.constant 12 : index
    %c0_95 = arith.constant 0 : index
    %236 = vector.load %arg2[%c12, %c0_95] : memref<18x128xf32, #tpu.memory_space<vmem>>, vector<1x128xf32>
    %c13 = arith.constant 13 : index
    %c0_96 = arith.constant 0 : index
    %237 = vector.load %arg2[%c13, %c0_96] : memref<18x128xf32, #tpu.memory_space<vmem>>, vector<1x16xf32>
    %c14 = arith.constant 14 : index
    %c0_97 = arith.constant 0 : index
    %238 = vector.load %arg2[%c14, %c0_97] : memref<18x128xf32, #tpu.memory_space<vmem>>, vector<1x16xf32>
    %c15 = arith.constant 15 : index
    %c0_98 = arith.constant 0 : index
    %239 = vector.load %arg2[%c15, %c0_98] : memref<18x128xf32, #tpu.memory_space<vmem>>, vector<1x16xf32>
    %c16 = arith.constant 16 : index
    %c0_99 = arith.constant 0 : index
    %240 = vector.load %arg2[%c16, %c0_99] : memref<18x128xf32, #tpu.memory_space<vmem>>, vector<1x16xf32>
    %c17 = arith.constant 17 : index
    %c0_100 = arith.constant 0 : index
    %241 = vector.load %arg2[%c17, %c0_100] : memref<18x128xf32, #tpu.memory_space<vmem>>, vector<1x16xf32>
    %cst_101 = arith.constant dense<0.000000e+00> : vector<16x48xf32>
    %242 = tpu.matmul %230, %231, %cst_101 {dimension_numbers = #tpu.dot_dimension_numbers<[1], [0], [0], [1], [0, 0, 1, 1], [], []>} : vector<16x16xf32>, vector<16x48xf32>, vector<16x48xf32> -> vector<16x48xf32>
    %243 = vector.broadcast %234 : vector<1x48xf32> to vector<16x48xf32>
    %244 = arith.addf %242, %243 : vector<16x48xf32>
    %245 = vector.extract_strided_slice %244 {offsets = [7, 0], sizes = [1, 4], strides = [1, 1]} : vector<16x48xf32> to vector<1x4xf32>
    %246 = vector.extract_strided_slice %244 {offsets = [0, 16], sizes = [8, 4], strides = [1, 1]} : vector<16x48xf32> to vector<8x4xf32>
    %247 = vector.extract_strided_slice %244 {offsets = [0, 32], sizes = [8, 4], strides = [1, 1]} : vector<16x48xf32> to vector<8x4xf32>
    %cst_102 = arith.constant dense<0.000000e+00> : vector<1x8xf32>
    %248 = tpu.matmul %245, %246, %cst_102 {dimension_numbers = #tpu.dot_dimension_numbers<[1], [1], [0], [0], [0, 0, 1, 0], [], []>} : vector<1x4xf32>, vector<8x4xf32>, vector<1x8xf32> -> vector<1x8xf32>
    %cst_103 = arith.constant 5.000000e-01 : f32
    %249 = vector.broadcast %cst_103 : f32 to vector<1x8xf32>
    %250 = arith.mulf %248, %249 : vector<1x8xf32>
    %cst_104 = arith.constant dense<0xFF800000> : vector<1xf32>
    %251 = vector.multi_reduction <maximumf>, %250, %cst_104 [1] : vector<1x8xf32> to vector<1xf32>
    %252 = vector.shape_cast %251 : vector<1xf32> to vector<1x1xf32>
    %253 = vector.broadcast %252 : vector<1x1xf32> to vector<1x8xf32>
    %254 = arith.subf %250, %253 : vector<1x8xf32>
    %255 = math.exp %254 : vector<1x8xf32>
    %cst_105 = arith.constant dense<0.000000e+00> : vector<1xf32>
    %256 = vector.multi_reduction <add>, %255, %cst_105 [1] : vector<1x8xf32> to vector<1xf32>
    %257 = vector.shape_cast %256 : vector<1xf32> to vector<1x1xf32>
    %258 = tpu.reciprocal %257 {approx = true} : vector<1x1xf32> -> vector<1x1xf32>
    %259 = vector.broadcast %258 : vector<1x1xf32> to vector<1x8xf32>
    %260 = arith.mulf %255, %259 : vector<1x8xf32>
    %cst_106 = arith.constant dense<0.000000e+00> : vector<1x4xf32>
    %261 = tpu.matmul %260, %247, %cst_106 {dimension_numbers = #tpu.dot_dimension_numbers<[1], [0], [0], [1], [0, 0, 1, 1], [], []>} : vector<1x8xf32>, vector<8x4xf32>, vector<1x4xf32> -> vector<1x4xf32>
    %c224 = arith.constant 224 : index
    %c0_107 = arith.constant 0 : index
    %262 = vector.load %arg1[%c224, %c0_107] : memref<384x128xf32, #tpu.memory_space<vmem>>, vector<4x16xf32>
    %cst_108 = arith.constant dense<0.000000e+00> : vector<1x16xf32>
    %263 = tpu.matmul %261, %262, %cst_108 {dimension_numbers = #tpu.dot_dimension_numbers<[1], [0], [0], [1], [0, 0, 1, 1], [], []>} : vector<1x4xf32>, vector<4x16xf32>, vector<1x16xf32> -> vector<1x16xf32>
    %264 = vector.extract_strided_slice %244 {offsets = [7, 4], sizes = [1, 4], strides = [1, 1]} : vector<16x48xf32> to vector<1x4xf32>
    %265 = vector.extract_strided_slice %244 {offsets = [0, 20], sizes = [8, 4], strides = [1, 1]} : vector<16x48xf32> to vector<8x4xf32>
    %266 = vector.extract_strided_slice %244 {offsets = [0, 36], sizes = [8, 4], strides = [1, 1]} : vector<16x48xf32> to vector<8x4xf32>
    %cst_109 = arith.constant dense<0.000000e+00> : vector<1x8xf32>
    %267 = tpu.matmul %264, %265, %cst_109 {dimension_numbers = #tpu.dot_dimension_numbers<[1], [1], [0], [0], [0, 0, 1, 0], [], []>} : vector<1x4xf32>, vector<8x4xf32>, vector<1x8xf32> -> vector<1x8xf32>
    %cst_110 = arith.constant 5.000000e-01 : f32
    %268 = vector.broadcast %cst_110 : f32 to vector<1x8xf32>
    %269 = arith.mulf %267, %268 : vector<1x8xf32>
    %cst_111 = arith.constant dense<0xFF800000> : vector<1xf32>
    %270 = vector.multi_reduction <maximumf>, %269, %cst_111 [1] : vector<1x8xf32> to vector<1xf32>
    %271 = vector.shape_cast %270 : vector<1xf32> to vector<1x1xf32>
    %272 = vector.broadcast %271 : vector<1x1xf32> to vector<1x8xf32>
    %273 = arith.subf %269, %272 : vector<1x8xf32>
    %274 = math.exp %273 : vector<1x8xf32>
    %cst_112 = arith.constant dense<0.000000e+00> : vector<1xf32>
    %275 = vector.multi_reduction <add>, %274, %cst_112 [1] : vector<1x8xf32> to vector<1xf32>
    %276 = vector.shape_cast %275 : vector<1xf32> to vector<1x1xf32>
    %277 = tpu.reciprocal %276 {approx = true} : vector<1x1xf32> -> vector<1x1xf32>
    %278 = vector.broadcast %277 : vector<1x1xf32> to vector<1x8xf32>
    %279 = arith.mulf %274, %278 : vector<1x8xf32>
    %cst_113 = arith.constant dense<0.000000e+00> : vector<1x4xf32>
    %280 = tpu.matmul %279, %266, %cst_113 {dimension_numbers = #tpu.dot_dimension_numbers<[1], [0], [0], [1], [0, 0, 1, 1], [], []>} : vector<1x8xf32>, vector<8x4xf32>, vector<1x4xf32> -> vector<1x4xf32>
    %c228 = arith.constant 228 : index
    %c0_114 = arith.constant 0 : index
    %281 = vector.load %arg1[%c228, %c0_114] : memref<384x128xf32, #tpu.memory_space<vmem>>, vector<4x16xf32>
    %cst_115 = arith.constant dense<0.000000e+00> : vector<1x16xf32>
    %282 = tpu.matmul %280, %281, %cst_115 {dimension_numbers = #tpu.dot_dimension_numbers<[1], [0], [0], [1], [0, 0, 1, 1], [], []>} : vector<1x4xf32>, vector<4x16xf32>, vector<1x16xf32> -> vector<1x16xf32>
    %283 = arith.addf %263, %282 : vector<1x16xf32>
    %284 = vector.extract_strided_slice %244 {offsets = [7, 8], sizes = [1, 4], strides = [1, 1]} : vector<16x48xf32> to vector<1x4xf32>
    %285 = vector.extract_strided_slice %244 {offsets = [0, 24], sizes = [8, 4], strides = [1, 1]} : vector<16x48xf32> to vector<8x4xf32>
    %286 = vector.extract_strided_slice %244 {offsets = [0, 40], sizes = [8, 4], strides = [1, 1]} : vector<16x48xf32> to vector<8x4xf32>
    %cst_116 = arith.constant dense<0.000000e+00> : vector<1x8xf32>
    %287 = tpu.matmul %284, %285, %cst_116 {dimension_numbers = #tpu.dot_dimension_numbers<[1], [1], [0], [0], [0, 0, 1, 0], [], []>} : vector<1x4xf32>, vector<8x4xf32>, vector<1x8xf32> -> vector<1x8xf32>
    %cst_117 = arith.constant 5.000000e-01 : f32
    %288 = vector.broadcast %cst_117 : f32 to vector<1x8xf32>
    %289 = arith.mulf %287, %288 : vector<1x8xf32>
    %cst_118 = arith.constant dense<0xFF800000> : vector<1xf32>
    %290 = vector.multi_reduction <maximumf>, %289, %cst_118 [1] : vector<1x8xf32> to vector<1xf32>
    %291 = vector.shape_cast %290 : vector<1xf32> to vector<1x1xf32>
    %292 = vector.broadcast %291 : vector<1x1xf32> to vector<1x8xf32>
    %293 = arith.subf %289, %292 : vector<1x8xf32>
    %294 = math.exp %293 : vector<1x8xf32>
    %cst_119 = arith.constant dense<0.000000e+00> : vector<1xf32>
    %295 = vector.multi_reduction <add>, %294, %cst_119 [1] : vector<1x8xf32> to vector<1xf32>
    %296 = vector.shape_cast %295 : vector<1xf32> to vector<1x1xf32>
    %297 = tpu.reciprocal %296 {approx = true} : vector<1x1xf32> -> vector<1x1xf32>
    %298 = vector.broadcast %297 : vector<1x1xf32> to vector<1x8xf32>
    %299 = arith.mulf %294, %298 : vector<1x8xf32>
    %cst_120 = arith.constant dense<0.000000e+00> : vector<1x4xf32>
    %300 = tpu.matmul %299, %286, %cst_120 {dimension_numbers = #tpu.dot_dimension_numbers<[1], [0], [0], [1], [0, 0, 1, 1], [], []>} : vector<1x8xf32>, vector<8x4xf32>, vector<1x4xf32> -> vector<1x4xf32>
    %c232 = arith.constant 232 : index
    %c0_121 = arith.constant 0 : index
    %301 = vector.load %arg1[%c232, %c0_121] : memref<384x128xf32, #tpu.memory_space<vmem>>, vector<4x16xf32>
    %cst_122 = arith.constant dense<0.000000e+00> : vector<1x16xf32>
    %302 = tpu.matmul %300, %301, %cst_122 {dimension_numbers = #tpu.dot_dimension_numbers<[1], [0], [0], [1], [0, 0, 1, 1], [], []>} : vector<1x4xf32>, vector<4x16xf32>, vector<1x16xf32> -> vector<1x16xf32>
    %303 = arith.addf %283, %302 : vector<1x16xf32>
    %304 = vector.extract_strided_slice %244 {offsets = [7, 12], sizes = [1, 4], strides = [1, 1]} : vector<16x48xf32> to vector<1x4xf32>
    %305 = vector.extract_strided_slice %244 {offsets = [0, 28], sizes = [8, 4], strides = [1, 1]} : vector<16x48xf32> to vector<8x4xf32>
    %306 = vector.extract_strided_slice %244 {offsets = [0, 44], sizes = [8, 4], strides = [1, 1]} : vector<16x48xf32> to vector<8x4xf32>
    %cst_123 = arith.constant dense<0.000000e+00> : vector<1x8xf32>
    %307 = tpu.matmul %304, %305, %cst_123 {dimension_numbers = #tpu.dot_dimension_numbers<[1], [1], [0], [0], [0, 0, 1, 0], [], []>} : vector<1x4xf32>, vector<8x4xf32>, vector<1x8xf32> -> vector<1x8xf32>
    %cst_124 = arith.constant 5.000000e-01 : f32
    %308 = vector.broadcast %cst_124 : f32 to vector<1x8xf32>
    %309 = arith.mulf %307, %308 : vector<1x8xf32>
    %cst_125 = arith.constant dense<0xFF800000> : vector<1xf32>
    %310 = vector.multi_reduction <maximumf>, %309, %cst_125 [1] : vector<1x8xf32> to vector<1xf32>
    %311 = vector.shape_cast %310 : vector<1xf32> to vector<1x1xf32>
    %312 = vector.broadcast %311 : vector<1x1xf32> to vector<1x8xf32>
    %313 = arith.subf %309, %312 : vector<1x8xf32>
    %314 = math.exp %313 : vector<1x8xf32>
    %cst_126 = arith.constant dense<0.000000e+00> : vector<1xf32>
    %315 = vector.multi_reduction <add>, %314, %cst_126 [1] : vector<1x8xf32> to vector<1xf32>
    %316 = vector.shape_cast %315 : vector<1xf32> to vector<1x1xf32>
    %317 = tpu.reciprocal %316 {approx = true} : vector<1x1xf32> -> vector<1x1xf32>
    %318 = vector.broadcast %317 : vector<1x1xf32> to vector<1x8xf32>
    %319 = arith.mulf %314, %318 : vector<1x8xf32>
    %cst_127 = arith.constant dense<0.000000e+00> : vector<1x4xf32>
    %320 = tpu.matmul %319, %306, %cst_127 {dimension_numbers = #tpu.dot_dimension_numbers<[1], [0], [0], [1], [0, 0, 1, 1], [], []>} : vector<1x8xf32>, vector<8x4xf32>, vector<1x4xf32> -> vector<1x4xf32>
    %c236 = arith.constant 236 : index
    %c0_128 = arith.constant 0 : index
    %321 = vector.load %arg1[%c236, %c0_128] : memref<384x128xf32, #tpu.memory_space<vmem>>, vector<4x16xf32>
    %cst_129 = arith.constant dense<0.000000e+00> : vector<1x16xf32>
    %322 = tpu.matmul %320, %321, %cst_129 {dimension_numbers = #tpu.dot_dimension_numbers<[1], [0], [0], [1], [0, 0, 1, 1], [], []>} : vector<1x4xf32>, vector<4x16xf32>, vector<1x16xf32> -> vector<1x16xf32>
    %323 = arith.addf %303, %322 : vector<1x16xf32>
    %324 = vector.extract_strided_slice %230 {offsets = [7, 0], sizes = [1, 16], strides = [1, 1]} : vector<16x16xf32> to vector<1x16xf32>
    %325 = vector.extract_strided_slice %244 {offsets = [15, 0], sizes = [1, 4], strides = [1, 1]} : vector<16x48xf32> to vector<1x4xf32>
    %326 = vector.extract_strided_slice %244 {offsets = [8, 16], sizes = [8, 4], strides = [1, 1]} : vector<16x48xf32> to vector<8x4xf32>
    %327 = vector.extract_strided_slice %244 {offsets = [8, 32], sizes = [8, 4], strides = [1, 1]} : vector<16x48xf32> to vector<8x4xf32>
    %cst_130 = arith.constant dense<0.000000e+00> : vector<1x8xf32>
    %328 = tpu.matmul %325, %326, %cst_130 {dimension_numbers = #tpu.dot_dimension_numbers<[1], [1], [0], [0], [0, 0, 1, 0], [], []>} : vector<1x4xf32>, vector<8x4xf32>, vector<1x8xf32> -> vector<1x8xf32>
    %cst_131 = arith.constant 5.000000e-01 : f32
    %329 = vector.broadcast %cst_131 : f32 to vector<1x8xf32>
    %330 = arith.mulf %328, %329 : vector<1x8xf32>
    %cst_132 = arith.constant dense<0xFF800000> : vector<1xf32>
    %331 = vector.multi_reduction <maximumf>, %330, %cst_132 [1] : vector<1x8xf32> to vector<1xf32>
    %332 = vector.shape_cast %331 : vector<1xf32> to vector<1x1xf32>
    %333 = vector.broadcast %332 : vector<1x1xf32> to vector<1x8xf32>
    %334 = arith.subf %330, %333 : vector<1x8xf32>
    %335 = math.exp %334 : vector<1x8xf32>
    %cst_133 = arith.constant dense<0.000000e+00> : vector<1xf32>
    %336 = vector.multi_reduction <add>, %335, %cst_133 [1] : vector<1x8xf32> to vector<1xf32>
    %337 = vector.shape_cast %336 : vector<1xf32> to vector<1x1xf32>
    %338 = tpu.reciprocal %337 {approx = true} : vector<1x1xf32> -> vector<1x1xf32>
    %339 = vector.broadcast %338 : vector<1x1xf32> to vector<1x8xf32>
    %340 = arith.mulf %335, %339 : vector<1x8xf32>
    %cst_134 = arith.constant dense<0.000000e+00> : vector<1x4xf32>
    %341 = tpu.matmul %340, %327, %cst_134 {dimension_numbers = #tpu.dot_dimension_numbers<[1], [0], [0], [1], [0, 0, 1, 1], [], []>} : vector<1x8xf32>, vector<8x4xf32>, vector<1x4xf32> -> vector<1x4xf32>
    %c224_135 = arith.constant 224 : index
    %c0_136 = arith.constant 0 : index
    %342 = vector.load %arg1[%c224_135, %c0_136] : memref<384x128xf32, #tpu.memory_space<vmem>>, vector<4x16xf32>
    %cst_137 = arith.constant dense<0.000000e+00> : vector<1x16xf32>
    %343 = tpu.matmul %341, %342, %cst_137 {dimension_numbers = #tpu.dot_dimension_numbers<[1], [0], [0], [1], [0, 0, 1, 1], [], []>} : vector<1x4xf32>, vector<4x16xf32>, vector<1x16xf32> -> vector<1x16xf32>
    %344 = vector.extract_strided_slice %244 {offsets = [15, 4], sizes = [1, 4], strides = [1, 1]} : vector<16x48xf32> to vector<1x4xf32>
    %345 = vector.extract_strided_slice %244 {offsets = [8, 20], sizes = [8, 4], strides = [1, 1]} : vector<16x48xf32> to vector<8x4xf32>
    %346 = vector.extract_strided_slice %244 {offsets = [8, 36], sizes = [8, 4], strides = [1, 1]} : vector<16x48xf32> to vector<8x4xf32>
    %cst_138 = arith.constant dense<0.000000e+00> : vector<1x8xf32>
    %347 = tpu.matmul %344, %345, %cst_138 {dimension_numbers = #tpu.dot_dimension_numbers<[1], [1], [0], [0], [0, 0, 1, 0], [], []>} : vector<1x4xf32>, vector<8x4xf32>, vector<1x8xf32> -> vector<1x8xf32>
    %cst_139 = arith.constant 5.000000e-01 : f32
    %348 = vector.broadcast %cst_139 : f32 to vector<1x8xf32>
    %349 = arith.mulf %347, %348 : vector<1x8xf32>
    %cst_140 = arith.constant dense<0xFF800000> : vector<1xf32>
    %350 = vector.multi_reduction <maximumf>, %349, %cst_140 [1] : vector<1x8xf32> to vector<1xf32>
    %351 = vector.shape_cast %350 : vector<1xf32> to vector<1x1xf32>
    %352 = vector.broadcast %351 : vector<1x1xf32> to vector<1x8xf32>
    %353 = arith.subf %349, %352 : vector<1x8xf32>
    %354 = math.exp %353 : vector<1x8xf32>
    %cst_141 = arith.constant dense<0.000000e+00> : vector<1xf32>
    %355 = vector.multi_reduction <add>, %354, %cst_141 [1] : vector<1x8xf32> to vector<1xf32>
    %356 = vector.shape_cast %355 : vector<1xf32> to vector<1x1xf32>
    %357 = tpu.reciprocal %356 {approx = true} : vector<1x1xf32> -> vector<1x1xf32>
    %358 = vector.broadcast %357 : vector<1x1xf32> to vector<1x8xf32>
    %359 = arith.mulf %354, %358 : vector<1x8xf32>
    %cst_142 = arith.constant dense<0.000000e+00> : vector<1x4xf32>
    %360 = tpu.matmul %359, %346, %cst_142 {dimension_numbers = #tpu.dot_dimension_numbers<[1], [0], [0], [1], [0, 0, 1, 1], [], []>} : vector<1x8xf32>, vector<8x4xf32>, vector<1x4xf32> -> vector<1x4xf32>
    %c228_143 = arith.constant 228 : index
    %c0_144 = arith.constant 0 : index
    %361 = vector.load %arg1[%c228_143, %c0_144] : memref<384x128xf32, #tpu.memory_space<vmem>>, vector<4x16xf32>
    %cst_145 = arith.constant dense<0.000000e+00> : vector<1x16xf32>
    %362 = tpu.matmul %360, %361, %cst_145 {dimension_numbers = #tpu.dot_dimension_numbers<[1], [0], [0], [1], [0, 0, 1, 1], [], []>} : vector<1x4xf32>, vector<4x16xf32>, vector<1x16xf32> -> vector<1x16xf32>
    %363 = arith.addf %343, %362 : vector<1x16xf32>
    %364 = vector.extract_strided_slice %244 {offsets = [15, 8], sizes = [1, 4], strides = [1, 1]} : vector<16x48xf32> to vector<1x4xf32>
    %365 = vector.extract_strided_slice %244 {offsets = [8, 24], sizes = [8, 4], strides = [1, 1]} : vector<16x48xf32> to vector<8x4xf32>
    %366 = vector.extract_strided_slice %244 {offsets = [8, 40], sizes = [8, 4], strides = [1, 1]} : vector<16x48xf32> to vector<8x4xf32>
    %cst_146 = arith.constant dense<0.000000e+00> : vector<1x8xf32>
    %367 = tpu.matmul %364, %365, %cst_146 {dimension_numbers = #tpu.dot_dimension_numbers<[1], [1], [0], [0], [0, 0, 1, 0], [], []>} : vector<1x4xf32>, vector<8x4xf32>, vector<1x8xf32> -> vector<1x8xf32>
    %cst_147 = arith.constant 5.000000e-01 : f32
    %368 = vector.broadcast %cst_147 : f32 to vector<1x8xf32>
    %369 = arith.mulf %367, %368 : vector<1x8xf32>
    %cst_148 = arith.constant dense<0xFF800000> : vector<1xf32>
    %370 = vector.multi_reduction <maximumf>, %369, %cst_148 [1] : vector<1x8xf32> to vector<1xf32>
    %371 = vector.shape_cast %370 : vector<1xf32> to vector<1x1xf32>
    %372 = vector.broadcast %371 : vector<1x1xf32> to vector<1x8xf32>
    %373 = arith.subf %369, %372 : vector<1x8xf32>
    %374 = math.exp %373 : vector<1x8xf32>
    %cst_149 = arith.constant dense<0.000000e+00> : vector<1xf32>
    %375 = vector.multi_reduction <add>, %374, %cst_149 [1] : vector<1x8xf32> to vector<1xf32>
    %376 = vector.shape_cast %375 : vector<1xf32> to vector<1x1xf32>
    %377 = tpu.reciprocal %376 {approx = true} : vector<1x1xf32> -> vector<1x1xf32>
    %378 = vector.broadcast %377 : vector<1x1xf32> to vector<1x8xf32>
    %379 = arith.mulf %374, %378 : vector<1x8xf32>
    %cst_150 = arith.constant dense<0.000000e+00> : vector<1x4xf32>
    %380 = tpu.matmul %379, %366, %cst_150 {dimension_numbers = #tpu.dot_dimension_numbers<[1], [0], [0], [1], [0, 0, 1, 1], [], []>} : vector<1x8xf32>, vector<8x4xf32>, vector<1x4xf32> -> vector<1x4xf32>
    %c232_151 = arith.constant 232 : index
    %c0_152 = arith.constant 0 : index
    %381 = vector.load %arg1[%c232_151, %c0_152] : memref<384x128xf32, #tpu.memory_space<vmem>>, vector<4x16xf32>
    %cst_153 = arith.constant dense<0.000000e+00> : vector<1x16xf32>
    %382 = tpu.matmul %380, %381, %cst_153 {dimension_numbers = #tpu.dot_dimension_numbers<[1], [0], [0], [1], [0, 0, 1, 1], [], []>} : vector<1x4xf32>, vector<4x16xf32>, vector<1x16xf32> -> vector<1x16xf32>
    %383 = arith.addf %363, %382 : vector<1x16xf32>
    %384 = vector.extract_strided_slice %244 {offsets = [15, 12], sizes = [1, 4], strides = [1, 1]} : vector<16x48xf32> to vector<1x4xf32>
    %385 = vector.extract_strided_slice %244 {offsets = [8, 28], sizes = [8, 4], strides = [1, 1]} : vector<16x48xf32> to vector<8x4xf32>
    %386 = vector.extract_strided_slice %244 {offsets = [8, 44], sizes = [8, 4], strides = [1, 1]} : vector<16x48xf32> to vector<8x4xf32>
    %cst_154 = arith.constant dense<0.000000e+00> : vector<1x8xf32>
    %387 = tpu.matmul %384, %385, %cst_154 {dimension_numbers = #tpu.dot_dimension_numbers<[1], [1], [0], [0], [0, 0, 1, 0], [], []>} : vector<1x4xf32>, vector<8x4xf32>, vector<1x8xf32> -> vector<1x8xf32>
    %cst_155 = arith.constant 5.000000e-01 : f32
    %388 = vector.broadcast %cst_155 : f32 to vector<1x8xf32>
    %389 = arith.mulf %387, %388 : vector<1x8xf32>
    %cst_156 = arith.constant dense<0xFF800000> : vector<1xf32>
    %390 = vector.multi_reduction <maximumf>, %389, %cst_156 [1] : vector<1x8xf32> to vector<1xf32>
    %391 = vector.shape_cast %390 : vector<1xf32> to vector<1x1xf32>
    %392 = vector.broadcast %391 : vector<1x1xf32> to vector<1x8xf32>
    %393 = arith.subf %389, %392 : vector<1x8xf32>
    %394 = math.exp %393 : vector<1x8xf32>
    %cst_157 = arith.constant dense<0.000000e+00> : vector<1xf32>
    %395 = vector.multi_reduction <add>, %394, %cst_157 [1] : vector<1x8xf32> to vector<1xf32>
    %396 = vector.shape_cast %395 : vector<1xf32> to vector<1x1xf32>
    %397 = tpu.reciprocal %396 {approx = true} : vector<1x1xf32> -> vector<1x1xf32>
    %398 = vector.broadcast %397 : vector<1x1xf32> to vector<1x8xf32>
    %399 = arith.mulf %394, %398 : vector<1x8xf32>
    %cst_158 = arith.constant dense<0.000000e+00> : vector<1x4xf32>
    %400 = tpu.matmul %399, %386, %cst_158 {dimension_numbers = #tpu.dot_dimension_numbers<[1], [0], [0], [1], [0, 0, 1, 1], [], []>} : vector<1x8xf32>, vector<8x4xf32>, vector<1x4xf32> -> vector<1x4xf32>
    %c236_159 = arith.constant 236 : index
    %c0_160 = arith.constant 0 : index
    %401 = vector.load %arg1[%c236_159, %c0_160] : memref<384x128xf32, #tpu.memory_space<vmem>>, vector<4x16xf32>
    %cst_161 = arith.constant dense<0.000000e+00> : vector<1x16xf32>
    %402 = tpu.matmul %400, %401, %cst_161 {dimension_numbers = #tpu.dot_dimension_numbers<[1], [0], [0], [1], [0, 0, 1, 1], [], []>} : vector<1x4xf32>, vector<4x16xf32>, vector<1x16xf32> -> vector<1x16xf32>
    %403 = arith.addf %383, %402 : vector<1x16xf32>
    %404 = vector.extract_strided_slice %230 {offsets = [15, 0], sizes = [1, 16], strides = [1, 1]} : vector<16x16xf32> to vector<1x16xf32>
    %405 = tpu.concatenate %324, %404 in 0 : vector<1x16xf32>, vector<1x16xf32> -> vector<2x16xf32>
    %406 = tpu.concatenate %323, %403 in 0 : vector<1x16xf32>, vector<1x16xf32> -> vector<2x16xf32>
    %407 = vector.broadcast %235 : vector<1x16xf32> to vector<2x16xf32>
    %408 = arith.addf %406, %407 : vector<2x16xf32>
    %409 = arith.addf %405, %408 : vector<2x16xf32>
    %cst_162 = arith.constant dense<0.000000e+00> : vector<2xf32>
    %410 = vector.multi_reduction <add>, %409, %cst_162 [1] : vector<2x16xf32> to vector<2xf32>
    %411 = vector.shape_cast %410 : vector<2xf32> to vector<2x1xf32>
    %cst_163 = arith.constant 1.600000e+01 : f32
    %412 = vector.broadcast %cst_163 : f32 to vector<2x1xf32>
    %413 = arith.divf %411, %412 : vector<2x1xf32>
    %414 = vector.broadcast %413 : vector<2x1xf32> to vector<2x16xf32>
    %415 = arith.subf %409, %414 : vector<2x16xf32>
    %416 = arith.mulf %415, %415 : vector<2x16xf32>
    %cst_164 = arith.constant dense<0.000000e+00> : vector<2xf32>
    %417 = vector.multi_reduction <add>, %416, %cst_164 [1] : vector<2x16xf32> to vector<2xf32>
    %418 = vector.shape_cast %417 : vector<2xf32> to vector<2x1xf32>
    %cst_165 = arith.constant 1.600000e+01 : f32
    %419 = vector.broadcast %cst_165 : f32 to vector<2x1xf32>
    %420 = arith.divf %418, %419 : vector<2x1xf32>
    %cst_166 = arith.constant 9.99999974E-6 : f32
    %421 = vector.broadcast %cst_166 : f32 to vector<2x1xf32>
    %422 = arith.addf %420, %421 : vector<2x1xf32>
    %423 = math.rsqrt %422 : vector<2x1xf32>
    %424 = vector.broadcast %423 : vector<2x1xf32> to vector<2x16xf32>
    %425 = arith.mulf %415, %424 : vector<2x16xf32>
    %426 = vector.broadcast %238 : vector<1x16xf32> to vector<2x16xf32>
    %427 = arith.mulf %425, %426 : vector<2x16xf32>
    %428 = vector.broadcast %239 : vector<1x16xf32> to vector<2x16xf32>
    %429 = arith.addf %427, %428 : vector<2x16xf32>
    %cst_167 = arith.constant dense<0.000000e+00> : vector<2x128xf32>
    %430 = tpu.matmul %429, %232, %cst_167 {dimension_numbers = #tpu.dot_dimension_numbers<[1], [0], [0], [1], [0, 0, 1, 1], [], []>} : vector<2x16xf32>, vector<16x128xf32>, vector<2x128xf32> -> vector<2x128xf32>
    %431 = vector.broadcast %236 : vector<1x128xf32> to vector<2x128xf32>
    %432 = arith.addf %430, %431 : vector<2x128xf32>
    %cst_168 = arith.constant 0.000000e+00 : f32
    %433 = vector.broadcast %cst_168 : f32 to vector<2x128xf32>
    %434 = arith.maximumf %432, %433 : vector<2x128xf32>
    %cst_169 = arith.constant dense<0.000000e+00> : vector<2x16xf32>
    %435 = tpu.matmul %434, %233, %cst_169 {dimension_numbers = #tpu.dot_dimension_numbers<[1], [0], [0], [1], [0, 0, 1, 1], [], []>} : vector<2x128xf32>, vector<128x16xf32>, vector<2x16xf32> -> vector<2x16xf32>
    %436 = vector.broadcast %237 : vector<1x16xf32> to vector<2x16xf32>
    %437 = arith.addf %435, %436 : vector<2x16xf32>
    %438 = arith.addf %429, %437 : vector<2x16xf32>
    %cst_170 = arith.constant dense<0.000000e+00> : vector<2xf32>
    %439 = vector.multi_reduction <add>, %438, %cst_170 [1] : vector<2x16xf32> to vector<2xf32>
    %440 = vector.shape_cast %439 : vector<2xf32> to vector<2x1xf32>
    %cst_171 = arith.constant 1.600000e+01 : f32
    %441 = vector.broadcast %cst_171 : f32 to vector<2x1xf32>
    %442 = arith.divf %440, %441 : vector<2x1xf32>
    %443 = vector.broadcast %442 : vector<2x1xf32> to vector<2x16xf32>
    %444 = arith.subf %438, %443 : vector<2x16xf32>
    %445 = arith.mulf %444, %444 : vector<2x16xf32>
    %cst_172 = arith.constant dense<0.000000e+00> : vector<2xf32>
    %446 = vector.multi_reduction <add>, %445, %cst_172 [1] : vector<2x16xf32> to vector<2xf32>
    %447 = vector.shape_cast %446 : vector<2xf32> to vector<2x1xf32>
    %cst_173 = arith.constant 1.600000e+01 : f32
    %448 = vector.broadcast %cst_173 : f32 to vector<2x1xf32>
    %449 = arith.divf %447, %448 : vector<2x1xf32>
    %cst_174 = arith.constant 9.99999974E-6 : f32
    %450 = vector.broadcast %cst_174 : f32 to vector<2x1xf32>
    %451 = arith.addf %449, %450 : vector<2x1xf32>
    %452 = math.rsqrt %451 : vector<2x1xf32>
    %453 = vector.broadcast %452 : vector<2x1xf32> to vector<2x16xf32>
    %454 = arith.mulf %444, %453 : vector<2x16xf32>
    %455 = vector.broadcast %240 : vector<1x16xf32> to vector<2x16xf32>
    %456 = arith.mulf %454, %455 : vector<2x16xf32>
    %457 = vector.broadcast %241 : vector<1x16xf32> to vector<2x16xf32>
    %458 = arith.addf %456, %457 : vector<2x16xf32>
    %c16_175 = arith.constant 16 : index
    %c0_176 = arith.constant 0 : index
    %459 = vector.load %arg1[%c16_175, %c0_176] : memref<384x128xf32, #tpu.memory_space<vmem>>, vector<16x1xf32>
    %c1 = arith.constant 1 : index
    %c0_177 = arith.constant 0 : index
    %460 = vector.load %arg2[%c1, %c0_177] : memref<18x128xf32, #tpu.memory_space<vmem>>, vector<1x1xf32>
    %cst_178 = arith.constant dense<0.000000e+00> : vector<2x1xf32>
    %461 = tpu.matmul %458, %459, %cst_178 {dimension_numbers = #tpu.dot_dimension_numbers<[1], [0], [0], [1], [0, 0, 1, 1], [], []>} : vector<2x16xf32>, vector<16x1xf32>, vector<2x1xf32> -> vector<2x1xf32>
    %462 = vector.broadcast %460 : vector<1x1xf32> to vector<2x1xf32>
    %463 = arith.addf %461, %462 : vector<2x1xf32>
    %c0_179 = arith.constant 0 : index
    %c0_180 = arith.constant 0 : index
    %464 = vector.load %arg3[%c0_179, %c0_180] : memref<2x1xf32, #tpu.memory_space<vmem>>, vector<2x1xf32>
    tpu.vector_store %arg3[%c0_179, %c0_180], %463 {strides = array<i32>} : memref<2x1xf32, #tpu.memory_space<vmem>>, vector<2x1xf32>,
    return
  }
}

</mosaic_0001>

<bundles_post_ra>
// kernel: transformer_forward.1
= control target key start
LH: loop header
LB: loop body
LE: loop exit
PB: predicated region body
PF: predicated region fallthrough
CT: control target
= control target key end

     0   :  { %8 = vsyncpa [#allocation3], 0  ;;  %s2619_s0 = inlined_call_operand.hbm [shape: f32[16,16], index: 0, kind: input, shape index: {}]   ;;  %s2620_s1 = inlined_call_operand.hbm [shape: f32[384,128], index: 1, kind: input, shape index: {}]   ;;  %s2621_s2 = inlined_call_operand.hbm [shape: f32[18,128], index: 2, kind: input, shape index: {}]   ;;  %s2622_s3 = inlined_call_operand.vmem [shape: f32[2,1], index: 3, kind: output, shape index: {}]  }
   0x1   :  { %9 = vsyncpa [#allocation5], 0  ;;  %s27_s14 = sshll.u32 %s2620_s1, 4  ;;  %s2276_s15 = smov [#allocation4]   ;;  %s28_s14 = int_to_ptr.hbm [resolvable:$true] %s27_s14 }
   0x2   :  { %s29_s16 = sshll.u32 %s2276_s15, 4  ;;  %s14_s19 = sshll.u32 %s2619_s0, 4  ;;  %s30_s16 = int_to_ptr.vmem [resolvable:$true] %s29_s16  ;;  %s15_s19 = int_to_ptr.hbm [resolvable:$true] %s14_s19 }
   0x3   :  { %s2277_s20 = smov 128   ;;  %s2278_s21 = smov 8  }
   0x4   :  { %35 = dma.hbm_to_vmem [thread:$0]  %s28_s14, 6144, %s30_s16, [#allocation5], %s2277_s20, %s2277_s20, %s2278_s21  }
   0x5   :  { %s2279_s22 = smov [#allocation2]   ;;  %s40_s26 = sshll.u32 %s2621_s2, 4  ;;  %s41_s26 = int_to_ptr.hbm [resolvable:$true] %s40_s26 }
   0x6   :  { %s16_s23 = sshll.u32 %s2279_s22, 4  ;;  %s2280_s1 = smov [#allocation6]   ;;  %s17_s23 = int_to_ptr.vmem [resolvable:$true] %s16_s23 }
   0x7   :  { %22 = dma.hbm_to_vmem [thread:$0]  %s15_s19, 256, %s17_s23, [#allocation3], %s2277_s20, %s2277_s20, %s2278_s21  }
   0x8   :  { %s42_s27 = sshll.u32 %s2280_s1, 4  ;;  %s43_s27 = int_to_ptr.vmem [resolvable:$true] %s42_s27 }
   0x9   :  { %48 = dma.hbm_to_vmem [thread:$0]  %s41_s26, 384, %s43_s27, [#allocation5], %s2277_s20, %s2277_s20, %s2278_s21  }
   0xa   :  { %2272 = dma.done.wait [#allocation3], 256  }
   0xb   :  { %2273 = vsyncadd [#allocation3], 4294967040 }
   0xc   :  { %2274 = dma.done.wait [#allocation5], 6528  }
   0xd   :  { %2275 = vsyncadd [#allocation5], 4294960768  ;;  %v64_v0 = vld [vmem:[#allocation4 + $0x8] sm:$0xff]  ;;  %v63_v1 = vld [vmem:[#allocation4] sm:$0xff]  ;;  %vm67_vm0 = vcmask 130048   ;;  %s2281_s0 = smov 112  }
   0xe   :  { %88 = vmatpush.msra.mxu0 %v64_v0  ;;  %v61_v2 = vld [vmem:[#allocation2] sm:$0xff]  ;;  %v98_v3 = vld [vmem:[#allocation4 + $0x28] sm:$0xff]  ;;  %v97_v4 = vld [vmem:[#allocation4 + $0x20] sm:$0xff]  ;;  %s2282_s2 = smov 104   ;;  %s2283_s28 = smov 108   ;;  %vm158_vm1 = vcmask 31744  }
   0xf   :  { %146 = vmatpush.msra.mxu1 %v98_v3  ;;  %v62_v5 = vld [vmem:[#allocation2 + $0x8] sm:$0xff]  ;;  %v2104_v6 = vld [vmem:[#allocation6] ss:$0 sm:$0xff]  ;;  %v2105_v9 = vld [vmem:[#allocation6 + $0x2] ss:$0 sm:$0xff]  ;;  %s2284_s29 = smov 120  }
  0x10   :  { %89 = vmatpush.msra.mxu0 %v63_v1  ;;  %s2285_s30 = smov 124   ;;  %vm184_vm2 = vcmask 64512   ;;  %s2286_s4 = smov 88   ;;  %v289_v53 = vld [vmem:[#allocation4 + $0x34] sm:$0xf]  ;;  %vm293_vm3 = vcmask 1043456  }
  0x11   :  { %1997 = vmatmul.msk.f32.vlgmr.msra.gmra.mxu0 %vm67_vm0, %v61_v2  ;;  %147 = vmatpush.msra.mxu1 %v97_v4  ;;  %s2287_s5 = smov 116   ;;  %s2288_s6 = smov 92   ;;  %v409_v54 = vld [vmem:[#allocation4 + $0x38] sm:$0xf]  ;;  %v222_v62 = vld [vmem:[#allocation4 + $0x30] sm:$0xf] }
  0x12   :  { %s2289_s7 = smov 100   ;;  %s2290_s8 = smov 96  }
  0x13   :  { %s2291_s9 = smov 84  }
  0x19   :  { %1998 = vmatmul.msk.f32.gmra.mxu0 %vm67_vm0, %v62_v5 }
  0x8e   :  { %v91_v7 = vpop.f32.mrf.mxu0 }
  0x8f   :  { %v2324_v8 = vadd.f32 %v2104_v6, %v91_v7 }
  0x91   :  { %1999 = vmatmul.msk.f32.vlgmr.msra.gmra.mxu1 %vm67_vm0, %v2324_v8 }
  0x96   :  { %v94_v12 = vpop.f32.mrf.mxu0 }
  0x97   :  { %v2340_v13 = vadd.f32 %v2104_v6, %v94_v12 }
  0x99   :  { %2000 = vmatmul.msk.f32.gmra.mxu1 %vm67_vm0, %v2340_v13 }
 0x10e   :  { %v149_v10 = vpop.f32.mrf.mxu1 }
 0x10f   :  { %v2328_v11 = vadd.f32 %v2105_v9, %v149_v10 }
 0x111   :  { %156 = vrot.lane.b32.xlu2 %v2328_v11, %s2281_s0  ;;  %345 = vrot.lane.b32.xlu1 %v2328_v11, %s2282_s2 }
 0x112   :  { %225 = vrot.lane.b32.xlu0 %v2328_v11, %s2283_s28 }
 0x116   :  { %v152_v19 = vpop.f32.mrf.mxu1 }
 0x117   :  { %v2355_v26 = vadd.f32 %v2105_v9, %v152_v19 }
 0x119   :  { %343 = vrot.lane.b32.xlu1 %v2328_v11, %s2284_s29 }
 0x11a   :  { %223 = vrot.lane.b32.xlu0 %v2328_v11, %s2285_s30 }
 0x16b   :  { %v157_v14 = vpop.permute.xlu2 %156 }
 0x16c   :  { %2001 = vmatpush.xpose.msk.msra.mxu2 %vm158_vm1, %v157_v14 }
 0x16f   :  { %2002 = vmatmul.msk.f32.vlgmr.msra.gmra.mxu2 %vm158_vm1, %v2328_v11 }
 0x183   :  { %v346_v15 = vpop.permute.xlu1 %345 }
 0x184   :  { %v226_v16 = vpop.permute.xlu0 %225  ;;  %2011 = vmatpush.xpose.msk.msrb.mxu1 %vm158_vm1, %v346_v15 }
 0x185   :  { %2004 = vmatpush.xpose.msk.msra.mxu3 %vm158_vm1, %v226_v16 }
 0x189   :  { %2007 = vmatpush.msk.msrb.mxu3 %vm293_vm3, %v289_v53 }
 0x18b   :  { %v344_v17 = vpop.permute.xlu1 %343 }
 0x18c   :  { %v224_v18 = vpop.permute.xlu0 %223  ;;  %2012 = vmatmul.msk.f32.vlgmr.msrb.gmra.mxu1 %vm158_vm1, %v344_v17 }
 0x18d   :  { %2005 = vmatmul.msk.f32.vlgmr.msra.gmra.mxu3 %vm158_vm1, %v224_v18 }
 0x18e   :  { %2014 = vmatpush.msk.msra.mxu3 %vm293_vm3, %v409_v54 }
 0x1f2   :  { %v180_v37 = vpop.f32.mrf.mxu2 }
 0x1f3   :  { %v183_v38 = vmul.f32 0.5, %v180_v37 }
 0x1f5   :  { %v185_v39 = vsel %vm184_vm2, %v183_v38, -inf }
 0x209   :  { %v368_v20 = vpop.f32.mrf.mxu1 }
 0x20a   :  { %v371_v21 = vmul.f32 0.5, %v368_v20 }
 0x20c   :  { %v372_v22 = vsel %vm184_vm2, %v371_v21, -inf }
 0x20d   :  { %373 = vmax.xlane.f32.xlu0 %v372_v22 }
 0x210   :  { %v248_v23 = vpop.f32.mrf.mxu3 }
 0x211   :  { %v251_v24 = vmul.f32 0.5, %v248_v23 }
 0x213   :  { %v252_v25 = vsel %vm184_vm2, %v251_v24, -inf }
 0x214   :  { %253 = vmax.xlane.f32.xlu2 %v252_v25 }
 0x221   :  { %383 = vrot.lane.b32.xlu0 %v2328_v11, %s2286_s4 }
 0x229   :  { %532 = vrot.lane.b32.xlu0 %v2355_v26, %s2281_s0 }
 0x231   :  { %437 = vrot.lane.b32.xlu0 %v2328_v11, %s2287_s5 }
 0x280   :  { %v374_v27 = vpop.xlane.xlu0 %373 }
 0x281   :  { %v375_v28 = vsub.f32 %v371_v21, %v374_v27 }
 0x283   :  { %v376_v29 = vmul.f32 1.442695, %v375_v28 }
 0x285   :  { %2122 = vpow2.f32 %v376_v29 }
 0x287   :  { %v254_v30 = vpop.xlane.xlu2 %253 }
 0x288   :  { %v255_v31 = vsub.f32 %v251_v24, %v254_v30 }
 0x28a   :  { %v256_v32 = vmul.f32 1.442695, %v255_v31 }
 0x28b   :  { %v2123_v33 = vpop.eup %2122 }
 0x28c   :  { %2124 = vpow2.f32 %v256_v32  ;;  %v378_v34 = vsel %vm184_vm2, %v2123_v33, 0.0 }
 0x28d   :  { %379 = vadd.xlane.f32.xlu2 %v378_v34 }
 0x292   :  { %v2125_v35 = vpop.eup %2124 }
 0x293   :  { %v258_v36 = vsel %vm184_vm2, %v2125_v35, 0.0  ;;  %v384_v43 = vpop.permute.xlu0 %383 }
 0x294   :  { %259 = vadd.xlane.f32.xlu1 %v258_v36 }
 0x29b   :  { %v533_v56 = vpop.permute.xlu0 %532 }
 0x29c   :  { %186 = vmax.xlane.f32.xlu1 %v185_v39  ;;  %v2423_v39 = vld [vmem:[#allocation4 + $0x3c] sm:$0xf] }
 0x2a3   :  { %v438_v7 = vpop.permute.xlu0 %437 }
 0x2a5   :  { %263 = vrot.lane.b32.xlu2 %v2328_v11, %s2288_s6 }
 0x2ad   :  { %439 = vrot.lane.b32.xlu2 %v2328_v11, %s2289_s7 }
 0x300   :  { %v380_v40 = vpop.xlane.xlu2 %379 }
 0x307   :  { %v260_v41 = vpop.xlane.xlu1 %259 }
 0x308   :  { %2126 = vrcp.f32 %v260_v41  ;;  %v264_v42 = vpop.permute.xlu2 %263 }
 0x309   :  { %284 = vmatpush.msrb.mxu2 %v264_v42  ;;  %2128 = vrcp.f32 %v380_v40 }
 0x30b   :  { %404 = vmatpush.msra.mxu2 %v384_v43 }
 0x30e   :  { %v2127_v44 = vpop.eup %2126 }
 0x30f   :  { %v187_v45 = vpop.xlane.xlu1 %186  ;;  %v262_v46 = vmul.f32 %v2127_v44, %v2125_v35  ;;  %v2129_v49 = vpop.eup %2128 }
 0x310   :  { %v188_v47 = vsub.f32 %v183_v38, %v187_v45  ;;  %v382_v50 = vmul.f32 %v2129_v49, %v2123_v33  ;;  %v440_v63 = vpop.permute.xlu2 %439 }
 0x311   :  { %2006 = vmatmul.msk.f32.vlgmr.msrb.gmra.mxu2 %vm184_vm2, %v262_v46 }
 0x312   :  { %v189_v48 = vmul.f32 1.442695, %v188_v47  ;;  %2019 = vmatpush.msk.msrb.mxu2 %vm293_vm3, %v2423_v39 }
 0x314   :  { %2130 = vpow2.f32 %v189_v48 }
 0x319   :  { %2013 = vmatmul.msk.f32.vlgmr.msra.gmra.mxu2 %vm184_vm2, %v382_v50 }
 0x31a   :  { %v2131_v51 = vpop.eup %2130 }
 0x31b   :  { %v191_v52 = vsel %vm184_vm2, %v2131_v51, 0.0 }
 0x31c   :  { %192 = vadd.xlane.f32.xlu1 %v191_v52 }
 0x335   :  { %196 = vrot.lane.b32.xlu1 %v2328_v11, %s2290_s8 }
 0x33d   :  { %570 = vrot.lane.b32.xlu1 %v2355_v26, %s2290_s8 }
 0x38f   :  { %v193_v57 = vpop.xlane.xlu1 %192 }
 0x390   :  { %2132 = vrcp.f32 %v193_v57 }
 0x394   :  { %v286_v55 = vpop.f32.mrf.mxu2 }
 0x395   :  { %2008 = vmatmul.msk.f32.vlgmr.msrb.gmra.mxu3 %vm158_vm1, %v286_v55 }
 0x396   :  { %2021 = vmatpush.xpose.msk.msrb.mxu3 %vm158_vm1, %v533_v56  ;;  %v2133_v59 = vpop.eup %2132  ;;  %v2438_v56 = vld [vmem:[#allocation6 + $0x3] ss:$0 sm:$0xff] }
 0x397   :  { %v195_v61 = vmul.f32 %v2133_v59, %v2131_v51 }
 0x39c   :  { %v406_v58 = vpop.f32.mrf.mxu2 }
 0x39d   :  { %2015 = vmatmul.msk.f32.vlgmr.msra.gmra.mxu3 %vm158_vm1, %v406_v58 }
 0x39e   :  { %2027 = vmatpush.msk.msra.mxu3 %vm293_vm3, %v289_v53 }
 0x3a5   :  { %2022 = vmatmul.msk.f32.vlgmr.msrb.gmra.mxu3 %vm158_vm1, %v2355_v26 }
 0x3a6   :  { %2034 = vmatpush.msk.msrb.mxu3 %vm293_vm3, %v409_v54 }
 0x3a7   :  { %v197_v60 = vpop.permute.xlu1 %196 }
 0x3a8   :  { %217 = vmatpush.msrb.mxu0 %v197_v60 }
 0x3a9   :  { %2003 = vmatmul.msk.f32.vlgmr.msrb.gmra.mxu0 %vm184_vm2, %v195_v61 }
 0x3aa   :  { %2009 = vmatpush.msk.msra.mxu0 %vm293_vm3, %v222_v62 }
 0x3ac   :  { %2016 = vmatpush.xpose.msk.msrb.mxu0 %vm158_vm1, %v440_v63 }
 0x3af   :  { %v571_v3 = vpop.permute.xlu1 %570 }
 0x418   :  { %v2387_v0 = vpop.f32.mrf.mxu3 }
 0x420   :  { %v2389_v1 = vpop.f32.mrf.mxu3 }
 0x426   :  { %v219_v2 = vpop.f32.mrf.mxu0 }
 0x427   :  { %2010 = vmatmul.msk.f32.vlgmr.msra.gmra.mxu0 %vm158_vm1, %v219_v2 }
 0x428   :  { %591 = vmatpush.msra.mxu0 %v571_v3  ;;  %v555_v4 = vpop.f32.mrf.mxu3 }
 0x429   :  { %v558_v5 = vmul.f32 0.5, %v555_v4 }
 0x42b   :  { %v559_v6 = vsel %vm184_vm2, %v558_v5, -inf }
 0x42c   :  { %560 = vmax.xlane.f32.xlu2 %v559_v6 }
 0x42f   :  { %2017 = vmatmul.msk.f32.vlgmr.msrb.gmra.mxu0 %vm158_vm1, %v438_v7 }
 0x430   :  { %2029 = vmatpush.msk.msrb.mxu0 %vm293_vm3, %v222_v62 }
 0x49f   :  { %v561_v9 = vpop.xlane.xlu2 %560 }
 0x4a0   :  { %v562_v10 = vsub.f32 %v558_v5, %v561_v9 }
 0x4a2   :  { %v563_v12 = vmul.f32 1.442695, %v562_v10 }
 0x4a4   :  { %2134 = vpow2.f32 %v563_v12  ;;  %v2395_v14 = vpop.f32.mrf.mxu0 }
 0x4a5   :  { %v341_v51 = vadd.f32 %v2395_v14, %v2387_v0 }
 0x4a7   :  { %v436_v55 = vadd.f32 %v2389_v1, %v341_v51 }
 0x4aa   :  { %v2135_v15 = vpop.eup %2134 }
 0x4ab   :  { %v565_v16 = vsel %vm184_vm2, %v2135_v15, 0.0 }
 0x4ac   :  { %566 = vadd.xlane.f32.xlu0 %v565_v16  ;;  %v462_v17 = vpop.f32.mrf.mxu0 }
 0x4ad   :  { %v465_v18 = vmul.f32 0.5, %v462_v17 }
 0x4af   :  { %v466_v19 = vsel %vm184_vm2, %v465_v18, -inf }
 0x4b0   :  { %467 = vmax.xlane.f32.xlu1 %v466_v19 }
 0x4c0   :  { %477 = vrot.lane.b32.xlu0 %v2328_v11, %s2291_s9 }
 0x4c8   :  { %710 = vrot.lane.b32.xlu0 %v2355_v26, %s2282_s2 }
 0x4c9   :  { %596 = vrot.lane.b32.xlu1 %v2355_v26, %s2285_s30 }
 0x4d0   :  { %800 = vrot.lane.b32.xlu0 %v2355_v26, %s2289_s7 }
 0x51f   :  { %v567_v20 = vpop.xlane.xlu0 %566 }
 0x520   :  { %2136 = vrcp.f32 %v567_v20 }
 0x523   :  { %v468_v21 = vpop.xlane.xlu1 %467 }
 0x524   :  { %v469_v22 = vsub.f32 %v465_v18, %v468_v21 }
 0x526   :  { %v2137_v23 = vpop.eup %2136  ;;  %v470_v24 = vmul.f32 1.442695, %v469_v22 }
 0x527   :  { %v569_v25 = vmul.f32 %v2137_v23, %v2135_v15 }
 0x528   :  { %2138 = vpow2.f32 %v470_v24 }
 0x529   :  { %2023 = vmatmul.msk.f32.vlgmr.msra.gmra.mxu0 %vm184_vm2, %v569_v25 }
 0x52e   :  { %v2139_v11 = vpop.eup %2138 }
 0x52f   :  { %v472_v27 = vsel %vm184_vm2, %v2139_v11, 0.0 }
 0x530   :  { %473 = vadd.xlane.f32.xlu2 %v472_v27 }
 0x532   :  { %v478_v28 = vpop.permute.xlu0 %477 }
 0x533   :  { %498 = vmatpush.msra.mxu1 %v478_v28 }
 0x53a   :  { %v711_v29 = vpop.permute.xlu0 %710 }
 0x53b   :  { %v597_v37 = vpop.permute.xlu1 %596 }
 0x542   :  { %v801_v30 = vpop.permute.xlu0 %800 }
 0x543   :  { %2036 = vmatpush.xpose.msk.msra.mxu0 %vm158_vm1, %v801_v30 }
 0x548   :  { %598 = vrot.lane.b32.xlu2 %v2355_v26, %s2283_s28 }
 0x550   :  { %708 = vrot.lane.b32.xlu2 %v2355_v26, %s2284_s29 }
 0x558   :  { %798 = vrot.lane.b32.xlu2 %v2355_v26, %s2287_s5 }
 0x5a3   :  { %v474_v31 = vpop.xlane.xlu2 %473 }
 0x5a4   :  { %2140 = vrcp.f32 %v474_v31 }
 0x5a6   :  { %v593_v32 = vpop.f32.mrf.mxu0 }
 0x5a7   :  { %2030 = vmatmul.msk.f32.vlgmr.msrb.gmra.mxu0 %vm158_vm1, %v593_v32 }
 0x5aa   :  { %v2141_v33 = vpop.eup %2140 }
 0x5ab   :  { %v476_v34 = vmul.f32 %v2141_v33, %v2139_v11  ;;  %v599_v35 = vpop.permute.xlu2 %598 }
 0x5ac   :  { %2024 = vmatpush.xpose.msk.msrb.mxu1 %vm158_vm1, %v599_v35 }
 0x5ad   :  { %2018 = vmatmul.msk.f32.vlgmr.msra.gmra.mxu1 %vm184_vm2, %v476_v34 }
 0x5b0   :  { %2031 = vmatpush.xpose.msk.msra.mxu1 %vm158_vm1, %v711_v29 }
 0x5b3   :  { %v709_v36 = vpop.permute.xlu2 %708 }
 0x5b5   :  { %2025 = vmatmul.msk.f32.vlgmr.msrb.gmra.mxu1 %vm158_vm1, %v597_v37 }
 0x5bb   :  { %v799_v38 = vpop.permute.xlu2 %798 }
 0x5bc   :  { %2037 = vmatmul.msk.f32.vlgmr.msra.gmra.mxu0 %vm158_vm1, %v799_v38 }
 0x5bd   :  { %2032 = vmatmul.msk.f32.vlgmr.msra.gmra.mxu1 %vm158_vm1, %v709_v36 }
 0x624   :  { %v2428_v41 = vpop.f32.mrf.mxu0 }
 0x62a   :  { %v500_v40 = vpop.f32.mrf.mxu1 }
 0x62b   :  { %2020 = vmatmul.msk.f32.vlgmr.msrb.gmra.mxu2 %vm158_vm1, %v500_v40  ;;  %v100_v40 = vld [vmem:[#allocation4 + $0x48] sm:$0xff] }
 0x632   :  { %v621_v42 = vpop.f32.mrf.mxu1 }
 0x633   :  { %v624_v43 = vmul.f32 0.5, %v621_v42 }
 0x635   :  { %v625_v44 = vsel %vm184_vm2, %v624_v43, -inf }
 0x636   :  { %626 = vmax.xlane.f32.xlu0 %v625_v44  ;;  %v99_v44 = vld [vmem:[#allocation4 + $0x40] sm:$0xff] }
 0x639   :  { %v823_v45 = vpop.f32.mrf.mxu0 }
 0x63a   :  { %v826_v46 = vmul.f32 0.5, %v823_v45  ;;  %v733_v47 = vpop.f32.mrf.mxu1 }
 0x63b   :  { %v736_v48 = vmul.f32 0.5, %v733_v47 }
 0x63c   :  { %v827_v49 = vsel %vm184_vm2, %v826_v46, -inf }
 0x63d   :  { %828 = vmax.xlane.f32.xlu2 %v827_v49  ;;  %v737_v50 = vsel %vm184_vm2, %v736_v48, -inf }
 0x63e   :  { %738 = vmax.xlane.f32.xlu1 %v737_v50  ;;  %v2462_v50 = vld [vmem:[#allocation6 + $0x6] ss:$0 sm:$0xff] }
 0x655   :  { %636 = vrot.lane.b32.xlu2 %v2355_v26, %s2288_s6 }
 0x6a9   :  { %v627_v52 = vpop.xlane.xlu0 %626 }
 0x6aa   :  { %v628_v53 = vsub.f32 %v624_v43, %v627_v52 }
 0x6ac   :  { %v629_v54 = vmul.f32 1.442695, %v628_v53 }
 0x6ae   :  { %2142 = vpow2.f32 %v629_v54  ;;  %v527_v57 = vpop.f32.mrf.mxu2  ;;  %v2466_v54 = vld [vmem:[#allocation6 + $0x7] ss:$0 sm:$0xff] }
 0x6af   :  { %v530_v58 = vadd.f32 %v527_v57, %v436_v55  ;;  %v116_v57 = vld [vmem:[#allocation4 + $0xc8] sm:$0xff] }
 0x6b0   :  { %v829_v59 = vpop.xlane.xlu2 %828  ;;  %983 = vmatpush.msrb.mxu0 %v116_v57 }
 0x6b1   :  { %v889_v60 = vadd.f32 %v2438_v56, %v530_v58  ;;  %v830_v61 = vsub.f32 %v826_v46, %v829_v59  ;;  %v739_v62 = vpop.xlane.xlu1 %738  ;;  %v115_v58 = vld [vmem:[#allocation4 + $0xc0] sm:$0xff]  ;;  %v114_v59 = vld [vmem:[#allocation4 + $0xb8] sm:$0xff] }
 0x6b2   :  { %v740_v63 = vsub.f32 %v736_v48, %v739_v62  ;;  %984 = vmatpush.msrb.mxu0 %v115_v58  ;;  %v111_v62 = vld [vmem:[#allocation4 + $0xa0] sm:$0xff] }
 0x6b3   :  { %v831_v2 = vmul.f32 1.442695, %v830_v61  ;;  %v891_v3 = vadd.f32 %v889_v60, %v2324_v8  ;;  %v2292_v8 = vmov 16.0   ;;  %v113_v60 = vld [vmem:[#allocation4 + $0xb0] sm:$0xff]  ;;  %v112_v61 = vld [vmem:[#allocation4 + $0xa8] sm:$0xff] }
 0x6b4   :  { %v2143_v0 = vpop.eup %2142  ;;  %v741_v4 = vmul.f32 1.442695, %v740_v63  ;;  %985 = vmatpush.msrb.mxu0 %v114_v59  ;;  %v110_v63 = vld [vmem:[#allocation4 + $0x98] sm:$0xff] }
 0x6b5   :  { %2144 = vpow2.f32 %v831_v2  ;;  %v893_v5 = vsel %vm67_vm0, %v891_v3, 0.0  ;;  %v631_v1 = vsel %vm184_vm2, %v2143_v0, 0.0  ;;  %v109_v2 = vld [vmem:[#allocation4 + $0x90] sm:$0xff] }
 0x6b6   :  { %2146 = vpow2.f32 %v741_v4  ;;  %894 = vadd.xlane.f32.xlu2 %v893_v5  ;;  %632 = vadd.xlane.f32.xlu0 %v631_v1  ;;  %v106_v4 = vld [vmem:[#allocation4 + $0x78] sm:$0xff]  ;;  %v105_v5 = vld [vmem:[#allocation4 + $0x70] sm:$0xff]  ;;  %v104_v1 = vld [vmem:[#allocation4 + $0x68] sm:$0xff] }
 0x6b7   :  { %2148 = vrcp.f32 %v2292_v8  ;;  %986 = vmatpush.msrb.mxu0 %v113_v60 }
 0x6b8   :  { %v637_v6 = vpop.permute.xlu2 %636 }
 0x6b9   :  { %657 = vmatpush.msra.mxu2 %v637_v6  ;;  %987 = vmatpush.msrb.mxu0 %v112_v61  ;;  %v103_v6 = vld [vmem:[#allocation4 + $0x60] sm:$0xff] }
 0x6bb   :  { %v2145_v7 = vpop.eup %2144  ;;  %988 = vmatpush.msrb.mxu0 %v111_v62 }
 0x6bc   :  { %v2147_v9 = vpop.eup %2146  ;;  %v833_v10 = vsel %vm184_vm2, %v2145_v7, 0.0 }
 0x6bd   :  { %v743_v12 = vsel %vm184_vm2, %v2147_v9, 0.0  ;;  %v2149_v14 = vpop.eup %2148  ;;  %989 = vmatpush.msrb.mxu0 %v110_v63 }
 0x6be   :  { %744 = vadd.xlane.f32.xlu1 %v743_v12  ;;  %834 = vadd.xlane.f32.xlu0 %v833_v10  ;;  %v900_v15 = vmul.f32 16.0, %v2149_v14  ;;  %vm904_vm4 = vweird.f32 %v2149_v14 }
 0x6bf   :  { %990 = vmatpush.msrb.mxu0 %v109_v2 }
 0x6c0   :  { %v901_v16 = vsub.f32 1.0, %v900_v15 }
 0x6c2   :  { %v902_v17 = vmul.f32 %v2149_v14, %v901_v16 }
 0x6c4   :  { %v903_v18 = vadd.f32 %v2149_v14, %v902_v17  ;;  %v2471_v17 = vld [vmem:[#allocation6 + $0x4] ss:$0 sm:$0xff] }
 0x6c6   :  { %v2450_v19 = vsel %vm904_vm4, %v2149_v14, %v903_v18 }
 0x6d2   :  { %838 = vrot.lane.b32.xlu0 %v2355_v26, %s2291_s9 }
 0x6d7   :  { %748 = vrot.lane.b32.xlu1 %v2355_v26, %s2286_s4 }
 0x729   :  { %v895_v20 = vpop.xlane.xlu2 %894  ;;  %v633_v21 = vpop.xlane.xlu0 %632 }
 0x72a   :  { %v906_v22 = vmul.f32 %v2450_v19, %v895_v20  ;;  %2150 = vrcp.f32 %v633_v21 }
 0x72c   :  { %v908_v23 = vsub.f32 %v891_v3, %v906_v22  ;;  %v108_v3 = vld [vmem:[#allocation4 + $0x88] sm:$0xff] }
 0x72d   :  { %991 = vmatpush.msrb.mxu0 %v108_v3  ;;  %v2112_v3 = vld [vmem:[#allocation6 + $0x9] ss:$0 sm:$0xff] }
 0x72e   :  { %v910_v24 = vmul.f32 %v908_v23, %v908_v23 }
 0x730   :  { %v2151_v25 = vpop.eup %2150  ;;  %v912_v26 = vsel %vm67_vm0, %v910_v24, 0.0 }
 0x731   :  { %v635_v11 = vmul.f32 %v2151_v25, %v2143_v0  ;;  %913 = vadd.xlane.f32.xlu1 %v912_v26  ;;  %v835_v27 = vpop.xlane.xlu0 %834  ;;  %v745_v28 = vpop.xlane.xlu1 %744  ;;  %v107_v0 = vld [vmem:[#allocation4 + $0x80] sm:$0xff] }
 0x732   :  { %2152 = vrcp.f32 %v835_v27  ;;  %992 = vmatpush.msrb.mxu0 %v107_v0 }
 0x733   :  { %2026 = vmatmul.msk.f32.vlgmr.msra.gmra.mxu2 %vm184_vm2, %v635_v11  ;;  %2154 = vrcp.f32 %v745_v28  ;;  %v2110_v28 = vld [vmem:[#allocation6 + $0x5] ss:$0 sm:$0xff] }
 0x734   :  { %993 = vmatpush.msrb.mxu0 %v106_v4 }
 0x736   :  { %994 = vmatpush.msrb.mxu0 %v105_v5 }
 0x738   :  { %v2153_v29 = vpop.eup %2152  ;;  %995 = vmatpush.msrb.mxu0 %v104_v1 }
 0x739   :  { %v837_v30 = vmul.f32 %v2153_v29, %v2145_v7  ;;  %v2155_v32 = vpop.eup %2154  ;;  %v102_v7 = vld [vmem:[#allocation4 + $0x58] sm:$0xff] }
 0x73a   :  { %v747_v33 = vmul.f32 %v2155_v32, %v2147_v9  ;;  %996 = vmatpush.msrb.mxu0 %v103_v6  ;;  %v101_v9 = vld [vmem:[#allocation4 + $0x50] sm:$0xff] }
 0x73c   :  { %997 = vmatpush.msrb.mxu0 %v102_v7 }
 0x73e   :  { %998 = vmatpush.msrb.mxu0 %v101_v9 }
 0x744   :  { %v839_v31 = vpop.permute.xlu0 %838 }
 0x745   :  { %859 = vmatpush.msrb.mxu1 %v839_v31 }
 0x746   :  { %2038 = vmatmul.msk.f32.vlgmr.msrb.gmra.mxu1 %vm184_vm2, %v837_v30 }
 0x749   :  { %v749_v34 = vpop.permute.xlu1 %748 }
 0x74a   :  { %769 = vmatpush.msrb.mxu2 %v749_v34 }
 0x74b   :  { %2033 = vmatmul.msk.f32.vlgmr.msrb.gmra.mxu2 %vm184_vm2, %v747_v33 }
 0x74c   :  { %2039 = vmatpush.msk.msra.mxu2 %vm293_vm3, %v2423_v39 }
 0x7a4   :  { %v914_v35 = vpop.xlane.xlu1 %913 }
 0x7a5   :  { %v918_v36 = vmul.f32 %v914_v35, %v2450_v19 }
 0x7a7   :  { %v920_v37 = vadd.f32 1e-05, %v918_v36 }
 0x7a9   :  { %2156 = vrsqrt.f32 %v920_v37  ;;  %vm928_vm6 = vweird.f32 %v920_v37 }
 0x7af   :  { %v2157_v38 = vpop.eup %2156 }
 0x7b0   :  { %v923_v42 = vmul.f32 %v2157_v38, %v920_v37  ;;  %vm929_vm5 = vweird.f32 %v2157_v38 }
 0x7b1   :  { %vm930_vm7 = vmor %vm928_vm6, %vm929_vm5  ;;  %vm1853_vm5 = vcmask 1040384   ;;  %vm1145_vm6 = vcmask 57344  }
 0x7b2   :  { %v924_v45 = vmul.f32 %v2157_v38, %v923_v42 }
 0x7b4   :  { %v925_v46 = vmul.f32 0.5, %v924_v45 }
 0x7b6   :  { %v659_v43 = vpop.f32.mrf.mxu2  ;;  %v926_v47 = vsub.f32 1.5, %v925_v46 }
 0x7b7   :  { %2028 = vmatmul.msk.f32.vlgmr.msra.gmra.mxu3 %vm158_vm1, %v659_v43 }
 0x7b8   :  { %971 = vmatpush.msra.mxu3 %v100_v40  ;;  %v927_v39 = vmul.f32 %v2157_v38, %v926_v47 }
 0x7ba   :  { %972 = vmatpush.msra.mxu3 %v99_v44  ;;  %v931_v49 = vsel %vm930_vm7, %v2157_v38, %v927_v39 }
 0x7bb   :  { %v942_v51 = vmul.f32 %v931_v49, %v908_v23 }
 0x7bd   :  { %v945_v53 = vmul.f32 %v2462_v50, %v942_v51  ;;  %v1059_v51 = vld [vmem:[#allocation4 + $0xd8] sm:$0xff] }
 0x7bf   :  { %v948_v55 = vadd.f32 %v2466_v54, %v945_v53 }
 0x7c3   :  { %v861_v48 = vpop.f32.mrf.mxu1 }
 0x7c4   :  { %2040 = vmatmul.msk.f32.vlgmr.msra.gmra.mxu2 %vm158_vm1, %v861_v48 }
 0x7ce   :  { %v771_v52 = vpop.f32.mrf.mxu2 }
 0x7cf   :  { %2035 = vmatmul.msk.f32.vlgmr.msrb.gmra.mxu3 %vm158_vm1, %v771_v52  ;;  %v1058_v52 = vld [vmem:[#allocation4 + $0xd0] sm:$0xff] }
 0x7d0   :  { %1107 = vmatpush.msrb.mxu3 %v1059_v51 }
 0x7d2   :  { %1108 = vmatpush.msrb.mxu3 %v1058_v52 }
 0x7d7   :  { %2041 = vmatmul.msk.f32.vlgmr.msra.gmra.mxu3 %vm67_vm0, %v948_v55 }
 0x83a   :  { %v682_v10 = vpop.f32.mrf.mxu3 }
 0x83b   :  { %v706_v12 = vadd.f32 %v2428_v41, %v682_v10  ;;  %v2113_v10 = vld [vmem:[#allocation6 + $0xa] ss:$0 sm:$0xff] }
 0x847   :  { %v884_v15 = vpop.f32.mrf.mxu2 }
 0x852   :  { %v794_v8 = vpop.f32.mrf.mxu3 }
 0x853   :  { %v797_v14 = vadd.f32 %v794_v8, %v706_v12 }
 0x855   :  { %v887_v16 = vadd.f32 %v884_v15, %v797_v14 }
 0x857   :  { %v890_v18 = vadd.f32 %v2438_v56, %v887_v16 }
 0x859   :  { %v892_v20 = vadd.f32 %v890_v18, %v2340_v13 }
 0x85a   :  { %v974_v21 = vpop.f32.mrf.mxu3 }
 0x85b   :  { %v975_v22 = vadd.f32 %v2471_v17, %v974_v21  ;;  %v896_v23 = vsel %vm67_vm0, %v892_v20, 0.0 }
 0x85c   :  { %897 = vadd.xlane.f32.xlu0 %v896_v23 }
 0x85d   :  { %v980_v24 = vmax.f32 %v975_v22, 0.0 }
 0x85f   :  { %999 = vmatmul.f32.vlgmr.msrb.gmra.mxu0 %v980_v24 }
 0x8cf   :  { %v898_v25 = vpop.xlane.xlu0 %897 }
 0x8d0   :  { %v907_v41 = vmul.f32 %v2450_v19, %v898_v25 }
 0x8d2   :  { %v909_v26 = vsub.f32 %v892_v20, %v907_v41 }
 0x8d4   :  { %v911_v11 = vmul.f32 %v909_v26, %v909_v26 }
 0x8d6   :  { %v915_v27 = vsel %vm67_vm0, %v911_v11, 0.0 }
 0x8d7   :  { %916 = vadd.xlane.f32.xlu2 %v915_v27 }
 0x8dc   :  { %v1000_v56 = vpop.f32.mrf.mxu0 }
 0x8dd   :  { %v1001_v29 = vadd.f32 %v2110_v28, %v1000_v56 }
 0x8df   :  { %v1006_v13 = vadd.f32 %v1001_v29, %v948_v55 }
 0x8e1   :  { %v1008_v30 = vsel %vm67_vm0, %v1006_v13, 0.0 }
 0x8e2   :  { %1009 = vadd.xlane.f32.xlu1 %v1008_v30 }
 0x94a   :  { %v917_v31 = vpop.xlane.xlu2 %916 }
 0x94b   :  { %v919_v32 = vmul.f32 %v917_v31, %v2450_v19 }
 0x94d   :  { %v921_v33 = vadd.f32 1e-05, %v919_v32 }
 0x94f   :  { %2158 = vrsqrt.f32 %v921_v33  ;;  %vm938_vm9 = vweird.f32 %v921_v33 }
 0x955   :  { %v2159_v34 = vpop.eup %2158  ;;  %v1010_v35 = vpop.xlane.xlu1 %1009 }
 0x956   :  { %v933_v36 = vmul.f32 %v2159_v34, %v921_v33  ;;  %v1014_v37 = vmul.f32 %v1010_v35, %v2450_v19  ;;  %vm939_vm8 = vweird.f32 %v2159_v34 }
 0x957   :  { %vm940_vm10 = vmor %vm938_vm9, %vm939_vm8 }
 0x958   :  { %v934_v38 = vmul.f32 %v2159_v34, %v933_v36  ;;  %v1016_v40 = vsub.f32 %v1006_v13, %v1014_v37 }
 0x95a   :  { %v935_v42 = vmul.f32 0.5, %v934_v38  ;;  %v1018_v43 = vmul.f32 %v1016_v40, %v1016_v40 }
 0x95c   :  { %v936_v44 = vsub.f32 1.5, %v935_v42  ;;  %v1020_v45 = vsel %vm67_vm0, %v1018_v43, 0.0 }
 0x95d   :  { %1021 = vadd.xlane.f32.xlu0 %v1020_v45 }
 0x95e   :  { %v937_v46 = vmul.f32 %v2159_v34, %v936_v44 }
 0x960   :  { %v941_v47 = vsel %vm940_vm10, %v2159_v34, %v937_v46 }
 0x961   :  { %v943_v48 = vmul.f32 %v941_v47, %v909_v26 }
 0x963   :  { %v946_v39 = vmul.f32 %v2462_v50, %v943_v48 }
 0x965   :  { %v949_v49 = vadd.f32 %v2466_v54, %v946_v39  ;;  %v2111_v54 = vld [vmem:[#allocation6 + $0x8] ss:$0 sm:$0xff] }
 0x967   :  { %2042 = vmatmul.msk.f32.gmra.mxu3 %vm67_vm0, %v949_v49 }
 0x9d0   :  { %v1022_v53 = vpop.xlane.xlu0 %1021 }
 0x9d1   :  { %v1026_v55 = vmul.f32 %v1022_v53, %v2450_v19 }
 0x9d3   :  { %v1028_v57 = vadd.f32 1e-05, %v1026_v55 }
 0x9d5   :  { %2160 = vrsqrt.f32 %v1028_v57  ;;  %vm1036_vm12 = vweird.f32 %v1028_v57 }
 0x9db   :  { %v2161_v58 = vpop.eup %2160 }
 0x9dc   :  { %v1031_v59 = vmul.f32 %v2161_v58, %v1028_v57  ;;  %vm1037_vm11 = vweird.f32 %v2161_v58 }
 0x9dd   :  { %vm1038_vm13 = vmor %vm1036_vm12, %vm1037_vm11  ;;  %vm1989_vm11 = vcmask 1024  }
 0x9de   :  { %v1032_v60 = vmul.f32 %v2161_v58, %v1031_v59 }
 0x9e0   :  { %v1033_v61 = vmul.f32 0.5, %v1032_v60 }
 0x9e2   :  { %v1034_v62 = vsub.f32 1.5, %v1033_v61 }
 0x9e4   :  { %v1035_v50 = vmul.f32 %v2161_v58, %v1034_v62 }
 0x9e6   :  { %v1039_v63 = vsel %vm1038_vm13, %v2161_v58, %v1035_v50 }
 0x9e7   :  { %v1050_v2 = vmul.f32 %v1039_v63, %v1016_v40 }
 0x9e9   :  { %v1053_v0 = vmul.f32 %v2111_v54, %v1050_v2 }
 0x9ea   :  { %v977_v4 = vpop.f32.mrf.mxu3 }
 0x9eb   :  { %v978_v5 = vadd.f32 %v2471_v17, %v977_v4  ;;  %v1056_v1 = vadd.f32 %v2112_v3, %v1053_v0 }
 0x9ed   :  { %v981_v6 = vmax.f32 %v978_v5, 0.0  ;;  %2043 = vmatmul.msk.f32.vlgmr.msrb.gmra.mxu3 %vm67_vm0, %v1056_v1  ;;  %v1849_v38 = vrot.slane %v1056_v1, 7 }
 0x9ef   :  { %1002 = vmatmul.f32.gmra.mxu0 %v981_v6 }
 0xa6c   :  { %v1003_v7 = vpop.f32.mrf.mxu0 }
 0xa6d   :  { %v1004_v9 = vadd.f32 %v2110_v28, %v1003_v7 }
 0xa6f   :  { %v1007_v12 = vadd.f32 %v1004_v9, %v949_v49 }
 0xa70   :  { %v1110_v8 = vpop.f32.mrf.mxu3 }
 0xa71   :  { %v2489_v14 = vadd.f32 %v2113_v10, %v1110_v8  ;;  %v1011_v15 = vsel %vm67_vm0, %v1007_v12, 0.0 }
 0xa72   :  { %1012 = vadd.xlane.f32.xlu2 %v1011_v15 }
 0xa73   :  { %1186 = vrot.lane.b32.xlu0 %v2489_v14, %s2283_s28  ;;  %v1117_v16 = vrot.slane %v2489_v14, 7 }
 0xa8a   :  { %1184 = vrot.lane.b32.xlu2 %v1117_v16, %s2285_s30 }
 0xa92   :  { %1118 = vrot.lane.b32.xlu2 %v2489_v14, %s2281_s0 }
 0xa9a   :  { %1224 = vrot.lane.b32.xlu2 %v2489_v14, %s2288_s6 }
 0xaa2   :  { %1305 = vrot.lane.b32.xlu2 %v2489_v14, %s2282_s2 }
 0xaaa   :  { %1303 = vrot.lane.b32.xlu2 %v1117_v16, %s2284_s29 }
 0xab2   :  { %1399 = vrot.lane.b32.xlu2 %v2489_v14, %s2289_s7 }
 0xae5   :  { %v1013_v17 = vpop.xlane.xlu2 %1012  ;;  %v1187_v18 = vpop.permute.xlu0 %1186 }
 0xae6   :  { %v1015_v20 = vmul.f32 %v1013_v17, %v2450_v19  ;;  %2048 = vmatpush.xpose.msk.msra.mxu3 %vm158_vm1, %v1187_v18 }
 0xae8   :  { %v1017_v21 = vsub.f32 %v1007_v12, %v1015_v20 }
 0xaea   :  { %v1019_v22 = vmul.f32 %v1017_v21, %v1017_v21 }
 0xaec   :  { %v1023_v23 = vsel %vm67_vm0, %v1019_v22, 0.0 }
 0xaed   :  { %1024 = vadd.xlane.f32.xlu1 %v1023_v23  ;;  %v1185_v24 = vpop.permute.xlu2 %1184 }
 0xaf5   :  { %v1119_v25 = vpop.permute.xlu2 %1118 }
 0xaf6   :  { %2045 = vmatpush.xpose.msk.msrb.mxu2 %vm158_vm1, %v1119_v25 }
 0xaf9   :  { %2046 = vmatmul.msk.f32.vlgmr.msrb.gmra.mxu2 %vm158_vm1, %v1117_v16 }
 0xafd   :  { %v1225_v41 = vpop.permute.xlu2 %1224 }
 0xafe   :  { %1245 = vmatpush.msra.mxu1 %v1225_v41 }
 0xb05   :  { %v1306_v26 = vpop.permute.xlu2 %1305 }
 0xb06   :  { %2055 = vmatpush.xpose.msk.msrb.mxu1 %vm158_vm1, %v1306_v26 }
 0xb0d   :  { %v1304_v59 = vpop.permute.xlu2 %1303 }
 0xb60   :  { %v1025_v11 = vpop.xlane.xlu1 %1024 }
 0xb61   :  { %v1027_v27 = vmul.f32 %v1025_v11, %v2450_v19 }
 0xb63   :  { %v1029_v28 = vadd.f32 1e-05, %v1027_v27 }
 0xb65   :  { %2162 = vrsqrt.f32 %v1029_v28  ;;  %vm1046_vm15 = vweird.f32 %v1029_v28 }
 0xb6b   :  { %v2163_v56 = vpop.eup %2162 }
 0xb6c   :  { %v1041_v29 = vmul.f32 %v2163_v56, %v1029_v28  ;;  %vm1047_vm14 = vweird.f32 %v2163_v56 }
 0xb6d   :  { %vm1048_vm4 = vmor %vm1046_vm15, %vm1047_vm14 }
 0xb6e   :  { %v1042_v13 = vmul.f32 %v2163_v56, %v1041_v29 }
 0xb70   :  { %v1043_v30 = vmul.f32 0.5, %v1042_v13  ;;  %v1183_v13 = vld [vmem:[#allocation4 + $0xe0] sm:$0xf] }
 0xb71   :  { %2053 = vmatpush.msk.msrb.mxu3 %vm293_vm3, %v1183_v13 }
 0xb72   :  { %v1044_v31 = vsub.f32 1.5, %v1043_v30  ;;  %v1250_v30 = vld [vmem:[#allocation4 + $0xe4] sm:$0xf] }
 0xb74   :  { %v1045_v32 = vmul.f32 %v2163_v56, %v1044_v31 }
 0xb76   :  { %v1049_v33 = vsel %vm1048_vm4, %v2163_v56, %v1045_v32 }
 0xb77   :  { %v1051_v34 = vmul.f32 %v1049_v33, %v1017_v21 }
 0xb79   :  { %v1054_v35 = vmul.f32 %v2111_v54, %v1051_v34  ;;  %v1400_v54 = vpop.permute.xlu2 %1399 }
 0xb7b   :  { %v1057_v36 = vadd.f32 %v2112_v3, %v1054_v35 }
 0xb7c   :  { %v1141_v6 = vpop.f32.mrf.mxu2 }
 0xb7d   :  { %2044 = vmatmul.msk.f32.gmra.mxu3 %vm67_vm0, %v1057_v36  ;;  %v1851_v37 = vrot.slane %v1057_v36, 6  ;;  %v1144_v7 = vmul.f32 0.5, %v1141_v6 }
 0xb7f   :  { %v2514_v40 = vsel %vm1853_vm5, %v1849_v38, %v1851_v37  ;;  %v1146_v9 = vsel %vm1145_vm6, %v1144_v7, -inf }
 0xb85   :  { %2049 = vmatmul.msk.f32.vlgmr.msra.gmra.mxu3 %vm158_vm1, %v1185_v24 }
 0xc00   :  { %v1113_v42 = vpop.f32.mrf.mxu3 }
 0xc01   :  { %v2517_v43 = vadd.f32 %v2113_v10, %v1113_v42 }
 0xc03   :  { %1493 = vrot.lane.b32.xlu1 %v2517_v43, %s2281_s0  ;;  %v1492_v48 = vrot.slane %v2517_v43, 7 }
 0xc08   :  { %v1209_v44 = vpop.f32.mrf.mxu3 }
 0xc09   :  { %v1212_v45 = vmul.f32 0.5, %v1209_v44 }
 0xc0b   :  { %v1213_v46 = vsel %vm1145_vm6, %v1212_v45, -inf }
 0xc0c   :  { %1214 = vmax.xlane.f32.xlu0 %v1213_v46 }
 0xc20   :  { %1397 = vrot.lane.b32.xlu0 %v1117_v16, %s2287_s5 }
 0xc28   :  { %1531 = vrot.lane.b32.xlu0 %v2517_v43, %s2290_s8 }
 0xc75   :  { %v1494_v47 = vpop.permute.xlu1 %1493 }
 0xc76   :  { %2065 = vmatpush.xpose.msk.msra.mxu0 %vm158_vm1, %v1494_v47 }
 0xc79   :  { %2066 = vmatmul.msk.f32.vlgmr.msra.gmra.mxu0 %vm158_vm1, %v1492_v48 }
 0xc7a   :  { %2071 = vmatpush.msk.msrb.mxu0 %vm293_vm3, %v1250_v30 }
 0xc7f   :  { %v1215_v39 = vpop.xlane.xlu0 %1214 }
 0xc80   :  { %v1216_v49 = vsub.f32 %v1212_v45, %v1215_v39 }
 0xc82   :  { %v1217_v51 = vmul.f32 1.442695, %v1216_v49 }
 0xc84   :  { %2164 = vpow2.f32 %v1217_v51 }
 0xc8a   :  { %v2165_v52 = vpop.eup %2164 }
 0xc8b   :  { %v1219_v53 = vsel %vm1145_vm6, %v2165_v52, 0.0 }
 0xc8c   :  { %1220 = vadd.xlane.f32.xlu1 %v1219_v53 }
 0xc92   :  { %v1398_v62 = vpop.permute.xlu0 %1397 }
 0xc9a   :  { %v1532_v63 = vpop.permute.xlu0 %1531 }
 0xcf6   :  { %v1516_v55 = vpop.f32.mrf.mxu0 }
 0xcf7   :  { %v1519_v57 = vmul.f32 0.5, %v1516_v55 }
 0xcf9   :  { %v1520_v58 = vsel %vm1145_vm6, %v1519_v57, -inf }
 0xcfa   :  { %1521 = vmax.xlane.f32.xlu2 %v1520_v58 }
 0xcff   :  { %v1221_v60 = vpop.xlane.xlu1 %1220 }
 0xd00   :  { %2166 = vrcp.f32 %v1221_v60  ;;  %v1369_v60 = vld [vmem:[#allocation4 + $0xe8] sm:$0xf] }
 0xd01   :  { %2058 = vmatpush.msk.msra.mxu3 %vm293_vm3, %v1369_v60  ;;  %2078 = vmatpush.msk.msra.mxu0 %vm293_vm3, %v1369_v60 }
 0xd06   :  { %v2167_v61 = vpop.eup %2166 }
 0xd07   :  { %v1223_v50 = vmul.f32 %v2167_v61, %v2165_v52 }
 0xd09   :  { %2050 = vmatmul.msk.f32.vlgmr.msra.gmra.mxu1 %vm184_vm2, %v1223_v50  ;;  %v2576_v50 = vld [vmem:[#allocation4 + $0xec] sm:$0xf] }
 0xd0a   :  { %2060 = vmatpush.xpose.msk.msra.mxu1 %vm158_vm1, %v1400_v54 }
 0xd11   :  { %2056 = vmatmul.msk.f32.vlgmr.msrb.gmra.mxu1 %vm158_vm1, %v1304_v59 }
 0xd12   :  { %1552 = vmatpush.msrb.mxu1 %v1532_v63  ;;  %1157 = vrot.lane.b32.xlu2 %v2489_v14, %s2290_s8 }
 0xd19   :  { %2061 = vmatmul.msk.f32.vlgmr.msra.gmra.mxu1 %vm158_vm1, %v1398_v62 }
 0xd1a   :  { %1437 = vrot.lane.b32.xlu2 %v2489_v14, %s2291_s9  ;;  %2073 = vmatpush.msk.msra.mxu1 %vm293_vm3, %v1183_v13 }
 0xd22   :  { %1557 = vrot.lane.b32.xlu2 %v1492_v48, %s2285_s30 }
 0xd2a   :  { %1671 = vrot.lane.b32.xlu2 %v2517_v43, %s2282_s2 }
 0xd32   :  { %1759 = vrot.lane.b32.xlu2 %v1492_v48, %s2287_s5 }
 0xd6d   :  { %v1522_v2 = vpop.xlane.xlu2 %1521 }
 0xd6e   :  { %v1523_v3 = vsub.f32 %v1519_v57, %v1522_v2 }
 0xd70   :  { %v1524_v0 = vmul.f32 1.442695, %v1523_v3 }
 0xd72   :  { %2168 = vpow2.f32 %v1524_v0 }
 0xd75   :  { %v1158_v4 = vpop.permute.xlu2 %1157 }
 0xd76   :  { %1178 = vmatpush.msra.mxu2 %v1158_v4 }
 0xd78   :  { %v2169_v5 = vpop.eup %2168  ;;  %2051 = vmatpush.msk.msrb.mxu2 %vm293_vm3, %v1250_v30 }
 0xd79   :  { %v1526_v1 = vsel %vm1145_vm6, %v2169_v5, 0.0 }
 0xd7a   :  { %1527 = vadd.xlane.f32.xlu1 %v1526_v1 }
 0xd7d   :  { %v1438_v44 = vpop.permute.xlu2 %1437 }
 0xd82   :  { %1147 = vmax.xlane.f32.xlu1 %v1146_v9 }
 0xd85   :  { %v1558_v39 = vpop.permute.xlu2 %1557 }
 0xd86   :  { %v1247_v10 = vpop.f32.mrf.mxu1 }
 0xd8d   :  { %v1672_v55 = vpop.permute.xlu2 %1671 }
 0xd8e   :  { %v1328_v12 = vpop.f32.mrf.mxu1 }
 0xd8f   :  { %v1331_v8 = vmul.f32 0.5, %v1328_v12 }
 0xd91   :  { %v1332_v15 = vsel %vm1145_vm6, %v1331_v8, -inf }
 0xd92   :  { %1333 = vmax.xlane.f32.xlu0 %v1332_v15 }
 0xd95   :  { %v1760_v59 = vpop.permute.xlu2 %1759 }
 0xd96   :  { %v1422_v25 = vpop.f32.mrf.mxu1 }
 0xd97   :  { %v1425_v41 = vmul.f32 0.5, %v1422_v25 }
 0xd99   :  { %v1426_v26 = vsel %vm1145_vm6, %v1425_v41, -inf }
 0xda6   :  { %1559 = vrot.lane.b32.xlu0 %v2517_v43, %s2283_s28 }
 0xdae   :  { %1669 = vrot.lane.b32.xlu0 %v1492_v48, %s2284_s29 }
 0xded   :  { %v1528_v16 = vpop.xlane.xlu1 %1527 }
 0xdee   :  { %2170 = vrcp.f32 %v1528_v16 }
 0xdf4   :  { %v2171_v17 = vpop.eup %2170 }
 0xdf5   :  { %v1530_v18 = vmul.f32 %v2171_v17, %v2169_v5  ;;  %v1148_v20 = vpop.xlane.xlu1 %1147 }
 0xdf6   :  { %v1149_v21 = vsub.f32 %v1144_v7, %v1148_v20 }
 0xdf7   :  { %2067 = vmatmul.msk.f32.vlgmr.msrb.gmra.mxu1 %vm184_vm2, %v1530_v18 }
 0xdf8   :  { %v1150_v22 = vmul.f32 1.442695, %v1149_v21 }
 0xdfa   :  { %2172 = vpow2.f32 %v1150_v22 }
 0xe00   :  { %v2173_v23 = vpop.eup %2172 }
 0xe01   :  { %v1152_v24 = vsel %vm1145_vm6, %v2173_v23, 0.0 }
 0xe02   :  { %1153 = vadd.xlane.f32.xlu1 %v1152_v24 }
 0xe05   :  { %v1334_v11 = vpop.xlane.xlu0 %1333 }
 0xe06   :  { %v1335_v27 = vsub.f32 %v1331_v8, %v1334_v11 }
 0xe08   :  { %v1336_v28 = vmul.f32 1.442695, %v1335_v27 }
 0xe0a   :  { %1427 = vmax.xlane.f32.xlu1 %v1426_v26  ;;  %2174 = vpow2.f32 %v1336_v28 }
 0xe10   :  { %v2175_v56 = vpop.eup %2174 }
 0xe11   :  { %v1338_v29 = vsel %vm1145_vm6, %v2175_v56, 0.0 }
 0xe18   :  { %v1560_v48 = vpop.permute.xlu0 %1559 }
 0xe20   :  { %v1670_v58 = vpop.permute.xlu0 %1669 }
 0xe23   :  { %1343 = vrot.lane.b32.xlu1 %v2489_v14, %s2286_s4 }
 0xe4d   :  { %1339 = vadd.xlane.f32.xlu1 %v1338_v29 }
 0xe74   :  { %v1554_v31 = vpop.f32.mrf.mxu1 }
 0xe75   :  { %2074 = vmatmul.msk.f32.vlgmr.msra.gmra.mxu1 %vm158_vm1, %v1554_v31  ;;  %v1154_v14 = vpop.xlane.xlu1 %1153 }
 0xe76   :  { %2176 = vrcp.f32 %v1154_v14 }
 0xe7c   :  { %v2177_v32 = vpop.eup %2176 }
 0xe7d   :  { %v1156_v33 = vmul.f32 %v2177_v32, %v2173_v23  ;;  %v1428_v34 = vpop.xlane.xlu1 %1427 }
 0xe7e   :  { %v1429_v35 = vsub.f32 %v1425_v41, %v1428_v34 }
 0xe7f   :  { %2047 = vmatmul.msk.f32.vlgmr.msra.gmra.mxu2 %vm184_vm2, %v1156_v33 }
 0xe80   :  { %v1430_v36 = vmul.f32 1.442695, %v1429_v35 }
 0xe82   :  { %2178 = vpow2.f32 %v1430_v36 }
 0xe87   :  { %2052 = vmatmul.msk.f32.vlgmr.msrb.gmra.mxu2 %vm158_vm1, %v1247_v10 }
 0xe88   :  { %v2179_v37 = vpop.eup %2178 }
 0xe89   :  { %v1432_v38 = vsel %vm1145_vm6, %v2179_v37, 0.0 }
 0xe8a   :  { %1433 = vadd.xlane.f32.xlu1 %v1432_v38 }
 0xe95   :  { %v1344_v42 = vpop.permute.xlu1 %1343 }
 0xe96   :  { %1364 = vmatpush.msra.mxu2 %v1344_v42 }
 0xe98   :  { %1458 = vmatpush.msrb.mxu2 %v1438_v44 }
 0xea3   :  { %1761 = vrot.lane.b32.xlu1 %v2517_v43, %s2289_s7 }
 0xec0   :  { %v1340_v45 = vpop.xlane.xlu1 %1339 }
 0xec1   :  { %2180 = vrcp.f32 %v1340_v45 }
 0xec7   :  { %v2181_v46 = vpop.eup %2180 }
 0xec8   :  { %v1342_v47 = vmul.f32 %v2181_v46, %v2175_v56 }
 0xeca   :  { %2057 = vmatmul.msk.f32.vlgmr.msra.gmra.mxu2 %vm184_vm2, %v1342_v47 }
 0xecb   :  { %2068 = vmatpush.xpose.msk.msra.mxu2 %vm158_vm1, %v1560_v48 }
 0xef2   :  { %v2581_v63 = vpop.f32.mrf.mxu1 }
 0xefd   :  { %v1434_v49 = vpop.xlane.xlu1 %1433 }
 0xefe   :  { %2182 = vrcp.f32 %v1434_v49 }
 0xf02   :  { %v1180_v51 = vpop.f32.mrf.mxu2 }
 0xf03   :  { %2054 = vmatmul.msk.f32.vlgmr.msrb.gmra.mxu3 %vm158_vm1, %v1180_v51 }
 0xf04   :  { %v2183_v52 = vpop.eup %2182  ;;  %2063 = vmatpush.msk.msrb.mxu3 %vm293_vm3, %v2576_v50 }
 0xf05   :  { %v1436_v53 = vmul.f32 %v2183_v52, %v2179_v37  ;;  %v2114_v52 = vld [vmem:[#allocation6 + $0xb] ss:$0 sm:$0xff] }
 0xf07   :  { %2062 = vmatmul.msk.f32.vlgmr.msrb.gmra.mxu2 %vm184_vm2, %v1436_v53 }
 0xf08   :  { %2075 = vmatpush.xpose.msk.msrb.mxu2 %vm158_vm1, %v1672_v55 }
 0xf0a   :  { %v1274_v61 = vpop.f32.mrf.mxu2 }
 0xf0f   :  { %2069 = vmatmul.msk.f32.vlgmr.msra.gmra.mxu2 %vm158_vm1, %v1558_v39 }
 0xf15   :  { %v1762_v57 = vpop.permute.xlu1 %1761 }
 0xf16   :  { %2080 = vmatpush.xpose.msk.msrb.mxu1 %vm158_vm1, %v1762_v57 }
 0xf17   :  { %2076 = vmatmul.msk.f32.vlgmr.msrb.gmra.mxu2 %vm158_vm1, %v1670_v58 }
 0xf19   :  { %2081 = vmatmul.msk.f32.vlgmr.msrb.gmra.mxu1 %vm158_vm1, %v1760_v59 }
 0xf4d   :  { %v1366_v62 = vpop.f32.mrf.mxu2 }
 0xf4e   :  { %2059 = vmatmul.msk.f32.vlgmr.msra.gmra.mxu3 %vm158_vm1, %v1366_v62 }
 0xf86   :  { %v1300_v10 = vpop.f32.mrf.mxu3 }
 0xf87   :  { %v1301_v12 = vadd.f32 %v1300_v10, %v1274_v61  ;;  %v1072_v10 = vld [vmem:[#allocation4 + $0x150] sm:$0xff] }
 0xf8a   :  { %v1460_v54 = vpop.f32.mrf.mxu2 }
 0xf8b   :  { %2064 = vmatmul.msk.f32.vlgmr.msrb.gmra.mxu3 %vm158_vm1, %v1460_v54 }
 0xf92   :  { %v1582_v2 = vpop.f32.mrf.mxu2 }
 0xf93   :  { %v1585_v3 = vmul.f32 0.5, %v1582_v2  ;;  %v1061_v2 = vld [vmem:[#allocation4 + $0xf8] sm:$0xff] }
 0xf95   :  { %v1586_v0 = vsel %vm1145_vm6, %v1585_v3, -inf }
 0xf96   :  { %1587 = vmax.xlane.f32.xlu1 %v1586_v0  ;;  %v1784_v4 = vpop.f32.mrf.mxu1  ;;  %v1077_v0 = vld [vmem:[#allocation4 + $0x178] sm:$0xff] }
 0xf97   :  { %v1787_v5 = vmul.f32 0.5, %v1784_v4  ;;  %v1076_v4 = vld [vmem:[#allocation4 + $0x170] sm:$0xff]  ;;  %1915 = vmatpush.msra.mxu1 %v1077_v0 }
 0xf99   :  { %v1788_v1 = vsel %vm1145_vm6, %v1787_v5, -inf  ;;  %1916 = vmatpush.msra.mxu1 %v1076_v4 }
 0xf9a   :  { %v1694_v6 = vpop.f32.mrf.mxu2  ;;  %1789 = vmax.xlane.f32.xlu0 %v1788_v1 }
 0xf9b   :  { %v1697_v7 = vmul.f32 0.5, %v1694_v6  ;;  %v1074_v6 = vld [vmem:[#allocation4 + $0x160] sm:$0xff] }
 0xf9d   :  { %v1698_v9 = vsel %vm1145_vm6, %v1697_v7, -inf }
 0xf9e   :  { %1699 = vmax.xlane.f32.xlu2 %v1698_v9  ;;  %v1073_v9 = vld [vmem:[#allocation4 + $0x158] sm:$0xff] }
 0xfd1   :  { %v1393_v8 = vpop.f32.mrf.mxu3 }
 0xfd2   :  { %v1396_v15 = vadd.f32 %v1393_v8, %v1301_v12  ;;  %v1071_v12 = vld [vmem:[#allocation4 + $0x148] sm:$0xff]  ;;  %v1070_v8 = vld [vmem:[#allocation4 + $0x140] sm:$0xff] }
0x1009   :  { %v1588_v16 = vpop.xlane.xlu1 %1587 }
0x100a   :  { %v1589_v17 = vsub.f32 %v1585_v3, %v1588_v16  ;;  %v1060_v3 = vld [vmem:[#allocation4 + $0xf0] sm:$0xff]  ;;  %v1069_v16 = vld [vmem:[#allocation4 + $0x138] sm:$0xff] }
0x100c   :  { %v1590_v18 = vmul.f32 1.442695, %v1589_v17 }
0x100d   :  { %v1790_v20 = vpop.xlane.xlu0 %1789 }
0x100e   :  { %2184 = vpow2.f32 %v1590_v18  ;;  %v1791_v21 = vsub.f32 %v1787_v5, %v1790_v20  ;;  %v1487_v38 = vpop.f32.mrf.mxu3  ;;  %v1075_v5 = vld [vmem:[#allocation4 + $0x168] sm:$0xff]  ;;  %v1068_v18 = vld [vmem:[#allocation4 + $0x130] sm:$0xff] }
0x100f   :  { %v1490_v53 = vadd.f32 %v1487_v38, %v1396_v15  ;;  %1917 = vmatpush.msra.mxu1 %v1075_v5 }
0x1010   :  { %v1792_v22 = vmul.f32 1.442695, %v1791_v21  ;;  %v1067_v21 = vld [vmem:[#allocation4 + $0x128] sm:$0xff] }
0x1011   :  { %v1700_v23 = vpop.xlane.xlu2 %1699  ;;  %1918 = vmatpush.msra.mxu1 %v1074_v6 }
0x1012   :  { %2186 = vpow2.f32 %v1792_v22  ;;  %v1701_v24 = vsub.f32 %v1697_v7, %v1700_v23  ;;  %v1066_v23 = vld [vmem:[#allocation4 + $0x120] sm:$0xff] }
0x1013   :  { %1919 = vmatpush.msra.mxu1 %v1073_v9 }
0x1014   :  { %v2185_v25 = vpop.eup %2184  ;;  %v1702_v41 = vmul.f32 1.442695, %v1701_v24 }
0x1015   :  { %v1592_v26 = vsel %vm1145_vm6, %v2185_v25, 0.0  ;;  %1920 = vmatpush.msra.mxu1 %v1072_v10 }
0x1016   :  { %2188 = vpow2.f32 %v1702_v41  ;;  %1593 = vadd.xlane.f32.xlu1 %v1592_v26  ;;  %v2115_v26 = vld [vmem:[#allocation6 + $0xe] ss:$0 sm:$0xff] }
0x1017   :  { %1921 = vmatpush.msra.mxu1 %v1071_v12 }
0x1018   :  { %v2187_v11 = vpop.eup %2186 }
0x1019   :  { %v1794_v27 = vsel %vm1145_vm6, %v2187_v11, 0.0  ;;  %1922 = vmatpush.msra.mxu1 %v1070_v8 }
0x101a   :  { %1795 = vadd.xlane.f32.xlu0 %v1794_v27 }
0x101b   :  { %1923 = vmatpush.msra.mxu1 %v1069_v16 }
0x101c   :  { %v2189_v28 = vpop.eup %2188 }
0x101d   :  { %v1704_v56 = vsel %vm1145_vm6, %v2189_v28, 0.0  ;;  %1924 = vmatpush.msra.mxu1 %v1068_v18 }
0x101e   :  { %1705 = vadd.xlane.f32.xlu2 %v1704_v56 }
0x101f   :  { %1925 = vmatpush.msra.mxu1 %v1067_v21 }
0x1021   :  { %1926 = vmatpush.msra.mxu1 %v1066_v23 }
0x102e   :  { %1799 = vrot.lane.b32.xlu0 %v2517_v43, %s2291_s9 }
0x102f   :  { %1597 = vrot.lane.b32.xlu1 %v2517_v43, %s2288_s6 }
0x1036   :  { %1709 = vrot.lane.b32.xlu2 %v2517_v43, %s2286_s4 }
0x1089   :  { %v1594_v13 = vpop.xlane.xlu1 %1593 }
0x108d   :  { %v1796_v29 = vpop.xlane.xlu0 %1795 }
0x108e   :  { %2190 = vrcp.f32 %v1796_v29 }
0x108f   :  { %2192 = vrcp.f32 %v1594_v13  ;;  %v1064_v13 = vld [vmem:[#allocation4 + $0x110] sm:$0xff] }
0x1091   :  { %v1706_v30 = vpop.xlane.xlu2 %1705 }
0x1092   :  { %2194 = vrcp.f32 %v1706_v30  ;;  %v1063_v30 = vld [vmem:[#allocation4 + $0x108] sm:$0xff] }
0x1094   :  { %v2191_v31 = vpop.eup %2190 }
0x1095   :  { %v2193_v14 = vpop.eup %2192  ;;  %v1798_v32 = vmul.f32 %v2191_v31, %v2187_v11  ;;  %v1062_v31 = vld [vmem:[#allocation4 + $0x100] sm:$0xff] }
0x1096   :  { %v1596_v34 = vmul.f32 %v2193_v14, %v2185_v25  ;;  %v1065_v25 = vld [vmem:[#allocation4 + $0x118] sm:$0xff]  ;;  %v2117_v14 = vld [vmem:[#allocation6 + $0xc] ss:$0 sm:$0xff] }
0x1097   :  { %1927 = vmatpush.msra.mxu1 %v1065_v25 }
0x1098   :  { %v2195_v43 = vpop.eup %2194 }
0x1099   :  { %v1710_v36 = vpop.permute.xlu2 %1709  ;;  %v1708_v37 = vmul.f32 %v2195_v43, %v2189_v28  ;;  %v2116_v28 = vld [vmem:[#allocation6 + $0xf] ss:$0 sm:$0xff]  ;;  %1928 = vmatpush.msra.mxu1 %v1064_v13 }
0x109b   :  { %1929 = vmatpush.msra.mxu1 %v1063_v30 }
0x109d   :  { %1930 = vmatpush.msra.mxu1 %v1062_v31 }
0x10a0   :  { %v1800_v33 = vpop.permute.xlu0 %1799 }
0x10a1   :  { %v1598_v35 = vpop.permute.xlu1 %1597  ;;  %1820 = vmatpush.msra.mxu2 %v1800_v33 }
0x10a2   :  { %1618 = vmatpush.msra.mxu3 %v1598_v35  ;;  %2082 = vmatmul.msk.f32.vlgmr.msra.gmra.mxu2 %vm184_vm2, %v1798_v32  ;;  %v2118_v35 = vld [vmem:[#allocation6 + $0xd] ss:$0 sm:$0xff] }
0x10a3   :  { %2070 = vmatmul.msk.f32.vlgmr.msra.gmra.mxu3 %vm184_vm2, %v1596_v34 }
0x10a4   :  { %1730 = vmatpush.msrb.mxu3 %v1710_v36 }
0x10a6   :  { %2083 = vmatpush.msk.msra.mxu3 %vm293_vm3, %v2576_v50 }
0x10ab   :  { %2077 = vmatmul.msk.f32.vlgmr.msrb.gmra.mxu3 %vm184_vm2, %v1708_v37  ;;  %vm1862_vm2 = vcmask 123904  }
0x1125   :  { %v1822_v42 = vpop.f32.mrf.mxu2 }
0x1126   :  { %v1620_v44 = vpop.f32.mrf.mxu3  ;;  %2084 = vmatmul.msk.f32.vlgmr.msra.gmra.mxu3 %vm158_vm1, %v1822_v42 }
0x1127   :  { %2072 = vmatmul.msk.f32.vlgmr.msrb.gmra.mxu0 %vm158_vm1, %v1620_v44 }
0x1128   :  { %1907 = vmatpush.msrb.mxu0 %v1061_v2 }
0x112a   :  { %1908 = vmatpush.msrb.mxu0 %v1060_v3 }
0x112e   :  { %v1732_v45 = vpop.f32.mrf.mxu3 }
0x112f   :  { %2079 = vmatmul.msk.f32.vlgmr.msra.gmra.mxu0 %vm158_vm1, %v1732_v45 }
0x11a4   :  { %v1643_v46 = vpop.f32.mrf.mxu0 }
0x11a5   :  { %v1667_v47 = vadd.f32 %v2581_v63, %v1643_v46 }
0x11a9   :  { %v1845_v49 = vpop.f32.mrf.mxu3 }
0x11ac   :  { %v1755_v48 = vpop.f32.mrf.mxu0 }
0x11ad   :  { %v1758_v39 = vadd.f32 %v1755_v48, %v1667_v47  ;;  %v1963_v48 = vld [vmem:[#allocation4 + $0x18] sm:$0xff] }
0x11ae   :  { %1983 = vmatpush.msrb.mxu2 %v1963_v48 }
0x11af   :  { %v1848_v51 = vadd.f32 %v1845_v49, %v1758_v39  ;;  %v1962_v39 = vld [vmem:[#allocation4 + $0x10] sm:$0xff] }
0x11b0   :  { %1984 = vmatpush.msrb.mxu2 %v1962_v39 }
0x11b1   :  { %v1856_v55 = vrot.slane %v1848_v51, 7 }
0x11b3   :  { %v1858_v57 = vsel %vm1853_vm5, %v1490_v53, %v1856_v55 }
0x11b4   :  { %v1860_v58 = vadd.f32 %v2114_v52, %v1858_v57 }
0x11b6   :  { %v1861_v59 = vadd.f32 %v1860_v58, %v2514_v40 }
0x11b8   :  { %v1863_v60 = vsel %vm1862_vm2, %v1861_v59, 0.0 }
0x11b9   :  { %1864 = vadd.xlane.f32.xlu0 %v1863_v60 }
0x122c   :  { %v1865_v61 = vpop.xlane.xlu0 %1864 }
0x122d   :  { %v1866_v62 = vmul.f32 %v1865_v61, %v2450_v19  ;;  %v2119_v61 = vld [vmem:[#allocation6 + $0x10] ss:$0 sm:$0xff] }
0x122f   :  { %v1867_v50 = vsub.f32 %v1861_v59, %v1866_v62 }
0x1231   :  { %v1868_v54 = vmul.f32 %v1867_v50, %v1867_v50 }
0x1233   :  { %v1869_v63 = vsel %vm1862_vm2, %v1868_v54, 0.0  ;;  %v2120_v54 = vld [vmem:[#allocation6 + $0x11] ss:$0 sm:$0xff] }
0x1234   :  { %1870 = vadd.xlane.f32.xlu1 %v1869_v63 }
0x12a7   :  { %v1871_v40 = vpop.xlane.xlu1 %1870 }
0x12a8   :  { %v1872_v1 = vmul.f32 %v1871_v40, %v2450_v19 }
0x12aa   :  { %v1873_v7 = vadd.f32 1e-05, %v1872_v1 }
0x12ac   :  { %2196 = vrsqrt.f32 %v1873_v7  ;;  %vm1880_vm3 = vweird.f32 %v1873_v7 }
0x12b2   :  { %v2197_v15 = vpop.eup %2196 }
0x12b3   :  { %v1875_v17 = vmul.f32 %v2197_v15, %v1873_v7  ;;  %vm1881_vm1 = vweird.f32 %v2197_v15 }
0x12b4   :  { %vm1882_vm7 = vmor %vm1880_vm3, %vm1881_vm1 }
0x12b5   :  { %v1876_v20 = vmul.f32 %v2197_v15, %v1875_v17 }
0x12b7   :  { %v1877_v22 = vmul.f32 0.5, %v1876_v20 }
0x12b9   :  { %v1878_v24 = vsub.f32 1.5, %v1877_v22 }
0x12bb   :  { %v1879_v41 = vmul.f32 %v2197_v15, %v1878_v24 }
0x12bd   :  { %v1883_v11 = vsel %vm1882_vm7, %v2197_v15, %v1879_v41 }
0x12be   :  { %v1884_v27 = vmul.f32 %v1883_v11, %v1867_v50 }
0x12c0   :  { %v1886_v56 = vmul.f32 %v2115_v26, %v1884_v27 }
0x12c2   :  { %v1888_v29 = vadd.f32 %v2116_v28, %v1886_v56 }
0x12c4   :  { %2085 = vmatmul.msk.f32.vlgmr.msrb.gmra.mxu0 %vm67_vm0, %v1888_v29 }
0x1341   :  { %v1910_v32 = vpop.f32.mrf.mxu0 }
0x1342   :  { %v1911_v33 = vadd.f32 %v2117_v14, %v1910_v32 }
0x1344   :  { %v1913_v34 = vmax.f32 %v1911_v33, 0.0 }
0x1346   :  { %1931 = vmatmul.f32.vlgmr.msra.gmra.mxu1 %v1913_v34 }
0x13c3   :  { %v1932_v36 = vpop.f32.mrf.mxu1 }
0x13c4   :  { %v1933_v43 = vadd.f32 %v2118_v35, %v1932_v36 }
0x13c6   :  { %v1935_v37 = vadd.f32 %v1933_v43, %v1888_v29 }
0x13c8   :  { %v1936_v38 = vsel %vm1862_vm2, %v1935_v37, 0.0 }
0x13c9   :  { %1937 = vadd.xlane.f32.xlu2 %v1936_v38 }
0x143c   :  { %v1938_v42 = vpop.xlane.xlu2 %1937 }
0x143d   :  { %v1939_v44 = vmul.f32 %v1938_v42, %v2450_v19 }
0x143f   :  { %v1940_v45 = vsub.f32 %v1935_v37, %v1939_v44 }
0x1441   :  { %v1941_v46 = vmul.f32 %v1940_v45, %v1940_v45 }
0x1443   :  { %v1942_v47 = vsel %vm1862_vm2, %v1941_v46, 0.0 }
0x1444   :  { %1943 = vadd.xlane.f32.xlu0 %v1942_v47 }
0x14b7   :  { %v1944_v49 = vpop.xlane.xlu0 %1943 }
0x14b8   :  { %v1945_v51 = vmul.f32 %v1944_v49, %v2450_v19  ;;  %v2121_v19 = vld [vmem:[#allocation6 + $0x1] ss:$0 sm:$0xff] }
0x14ba   :  { %v1946_v52 = vadd.f32 1e-05, %v1945_v51 }
0x14bc   :  { %2198 = vrsqrt.f32 %v1946_v52  ;;  %vm1953_vm9 = vweird.f32 %v1946_v52 }
0x14c2   :  { %v2199_v53 = vpop.eup %2198 }
0x14c3   :  { %v1948_v55 = vmul.f32 %v2199_v53, %v1946_v52  ;;  %vm1954_vm8 = vweird.f32 %v2199_v53 }
0x14c4   :  { %vm1955_vm10 = vmor %vm1953_vm9, %vm1954_vm8 }
0x14c5   :  { %v1949_v57 = vmul.f32 %v2199_v53, %v1948_v55 }
0x14c7   :  { %v1950_v58 = vmul.f32 0.5, %v1949_v57 }
0x14c9   :  { %v1951_v59 = vsub.f32 1.5, %v1950_v58 }
0x14cb   :  { %v1952_v60 = vmul.f32 %v2199_v53, %v1951_v59 }
0x14cd   :  { %v1956_v62 = vsel %vm1955_vm10, %v2199_v53, %v1952_v60 }
0x14ce   :  { %v1957_v50 = vmul.f32 %v1956_v62, %v1940_v45 }
0x14d0   :  { %v1959_v63 = vmul.f32 %v2119_v61, %v1957_v50 }
0x14d2   :  { %v1961_v2 = vadd.f32 %v2120_v54, %v1959_v63 }
0x14d4   :  { %2086 = vmatmul.msk.f32.vlgmr.msrb.gmra.mxu2 %vm67_vm0, %v1961_v2 }
0x1557   :  { %v1986_v3 = vpop.f32.mrf.mxu2 }
0x1558   :  { %v1987_v0 = vadd.f32 %v2121_v19, %v1986_v3 }
0x155a   :  { %1990 = vst.msk [vmem:[%s2622_s3] sm:$0x3] %vm1989_vm11, %v1987_v0 }
0x155b   :  { %1995 = vsyncpa [#allocation3], 1 }
0x155c   :  { %1996 = vsyncpa [#allocation5], 1 }

</bundles_post_ra>
